<compile_context>
chip_gen: v7x
topology: tpu7x:2x2x1
jax: 0.10.0
libtpu: 0.0.40
codegen_flags: <defaults>
</compile_context>

<pallas_src>
import functools

import jax
import jax.numpy as jnp
from jax.experimental import pallas as pl
from jax.experimental.pallas import tpu as pltpu

BT = 8  # batch-tile: one sublane tile of rows; every in-kernel slice is (8,128)-aligned


# ------------------------------ fused kernel ---------------------------------------

def _readout_fused_kernel(x_ref, w1_ref, b1_ref, wih_ref, whh_hbm, lb_ref,
                          w2_ref, b2_ref, o_ref, gx_ref, whh_vmem, whh_sem,
                          *, S, H):
    """One grid point = one batch tile of BT rows, full sequence.

    x_ref   : (S*BT, K*F)  row r = t*BT + b_local, cols k*F + f        (f32)
    w1_ref  : (K*F, K*H1)  block-diagonal fc1 weight                   (f32)
    b1_ref  : (1, K*H1)    fc1 bias tiled K times                      (f32)
    wih_ref : (K*H1, 4H)   LSTM W_ih^T                                 (bf16)
    whh_hbm : (H, 4H)      LSTM W_hh^T, left in HBM (manual DMA)       (bf16)
    lb_ref  : (1, 4H)      b_ih + b_hh folded                          (f32)
    w2_ref  : (H, out)     fc2 weight^T          b2_ref: (1, out)      (f32)
    o_ref   : (BT, out)    output rows for this batch tile
    gx_ref  : (S*BT, 4H)   VMEM scratch: hoisted input projection
    whh_vmem: (H, 4H)      VMEM landing buffer for W_hh (bf16)
    whh_sem : DMA semaphore
    """
    # Kick off the W_hh DMA immediately so it hides behind Phase 1.
    whh_cp = pltpu.make_async_copy(whh_hbm, whh_vmem, whh_sem)
    whh_cp.start()

    # ---- Phase 1: two MXU issues, gx scratch written exactly once ----------------
    y1 = jnp.maximum(
        jnp.dot(x_ref[...], w1_ref[...], preferred_element_type=jnp.float32)
        + b1_ref[...],
        0.0,
    )
    gx_ref[...] = jnp.dot(y1.astype(jnp.bfloat16), wih_ref[...],
                          preferred_element_type=jnp.float32) + lb_ref[...]

    # W_hh only needed from here on.
    whh_cp.wait()

    # ---- Phase 2: serial LSTM recurrence, fully unrolled, h/c carried in vregs ----
    h = jnp.zeros((BT, H), jnp.float32)
    c = jnp.zeros((BT, H), jnp.float32)
    for t in range(S):
        gates = gx_ref[t * BT:(t + 1) * BT, :] + jnp.dot(
            h.astype(jnp.bfloat16), whh_vmem[...],
            preferred_element_type=jnp.float32)
        # PyTorch gate order along the 4H axis: i, f, g, o (lane-aligned slices).
        i_g = jax.nn.sigmoid(gates[:, 0 * H:1 * H])
        f_g = jax.nn.sigmoid(gates[:, 1 * H:2 * H])
        g_g = jnp.tanh(gates[:, 2 * H:3 * H])
        o_g = jax.nn.sigmoid(gates[:, 3 * H:4 * H])
        c = f_g * c + i_g * g_g
        h = o_g * jnp.tanh(c)

    # ---- Phase 3: fc2 epilogue on the final hidden state (== lstm_out[:, -1, :]) --
    out = jnp.dot(h, w2_ref[...], preferred_element_type=jnp.float32) + b2_ref[...]
    o_ref[...] = out.astype(o_ref.dtype)


# ------------------------------ module wrapper -------------------------------------

def init_readout_params(key, feature_size=32, k=5, hidden_dim1=8,
                        hidden_dim2=128, out_dim=1):
    ks = jax.random.split(key, 8)

    def u(key, shape, bound):
        return jax.random.uniform(key, shape, jnp.float32, -bound, bound)

    b1 = 1.0 / jnp.sqrt(feature_size)
    in_lstm = hidden_dim1 * k
    bl = 1.0 / jnp.sqrt(hidden_dim2)
    b2 = 1.0 / jnp.sqrt(hidden_dim2)

    fc1_w = u(ks[0], (feature_size, hidden_dim1), b1)   # (F, H1), transposed layout
    fc1_b = u(ks[1], (1, hidden_dim1), b1)

    return {
        # original fc1 (for the reference path)
        "fc1_w": fc1_w,
        "fc1_b": fc1_b,
        # block-diagonal fc1 for the kernel: (K*F, K*H1), built once here
        "fc1_w_bd": jnp.kron(jnp.eye(k, dtype=jnp.float32), fc1_w),
        "fc1_b_k": jnp.tile(fc1_b, (1, k)),
        # lstm: weight_ih_l0 / weight_hh_l0 stored transposed, bf16 (halved DMA bytes)
        "w_ih_t": u(ks[2], (in_lstm, 4 * hidden_dim2), bl).astype(jnp.bfloat16),
        "w_hh_t": u(ks[3], (hidden_dim2, 4 * hidden_dim2), bl).astype(jnp.bfloat16),
        # b_ih + b_hh folded into one bias row (f32)
        "lstm_b": u(ks[4], (1, 4 * hidden_dim2), bl) + u(ks[5], (1, 4 * hidden_dim2), bl),
        # fc2: Linear(hidden_dim2, out_dim), stored transposed (in, out)
        "fc2_w": u(ks[6], (hidden_dim2, out_dim), b2),
        "fc2_b": u(ks[7], (1, out_dim), b2),
    }


@jax.jit
def readout_forward(params, x):
    """x: (B, S, K, feature_size) -> (B, out_dim). One fused pallas_call."""
    B, S, K, F = x.shape
    H1 = params["fc1_w"].shape[1]
    H = params["w_hh_t"].shape[0]
    out_dim = params["fc2_w"].shape[1]

    # Pad batch to whole sublane tiles; pad rows are independent garbage, sliced off.
    nbt = (B + BT - 1) // BT
    Bp = nbt * BT
    x_p = jnp.pad(x, ((0, Bp - B), (0, 0), (0, 0), (0, 0)))
    # (nbt*S*BT, K*F): batch tile bt occupies rows [bt*S*BT, (bt+1)*S*BT),
    # within a tile row = t*BT + b_local, columns k*F + f.
    x2d = jnp.transpose(x_p.reshape(nbt, BT, S, K * F), (0, 2, 1, 3)) \
             .reshape(nbt * S * BT, K * F)

    kernel = functools.partial(_readout_fused_kernel, S=S, H=H)
    out_p = pl.pallas_call(
        kernel,
        out_shape=jax.ShapeDtypeStruct((nbt * BT, out_dim), jnp.float32),
        grid_spec=pltpu.PrefetchScalarGridSpec(
            num_scalar_prefetch=0,
            grid=(nbt,),  # one grid point per batch tile; time recurrence stays inside
            in_specs=[
                pl.BlockSpec((S * BT, K * F), lambda i: (i, 0)),
                pl.BlockSpec((K * F, K * H1), lambda i: (0, 0)),
                pl.BlockSpec((1, K * H1), lambda i: (0, 0)),
                pl.BlockSpec((K * H1, 4 * H), lambda i: (0, 0)),
                pl.BlockSpec(memory_space=pl.ANY),           # W_hh: manual overlapped DMA
                pl.BlockSpec((1, 4 * H), lambda i: (0, 0)),
                pl.BlockSpec((H, out_dim), lambda i: (0, 0)),
                pl.BlockSpec((1, out_dim), lambda i: (0, 0)),
            ],
            out_specs=pl.BlockSpec((BT, out_dim), lambda i: (i, 0)),
            scratch_shapes=[
                pltpu.VMEM((S * BT, 4 * H), jnp.float32),    # gx: hoisted input projection
                pltpu.VMEM((H, 4 * H), jnp.bfloat16),        # W_hh landing buffer
                pltpu.SemaphoreType.DMA(()),
            ],
        ),
        compiler_params=pltpu.CompilerParams(
            # Batch tiles are independent (LSTM is row-independent) -> shardable
            # across v7x megacore. The serial time loop lives inside each tile.
            dimension_semantics=("parallel",)),
    )(x2d, params["fc1_w_bd"], params["fc1_b_k"], params["w_ih_t"],
      params["w_hh_t"], params["lstm_b"], params["fc2_w"], params["fc2_b"])
    return out_p[:B]


# ------------------------------ pure-JAX reference ---------------------------------

def readout_reference(params, x):
    B, S, K, F = x.shape
    H1 = params["fc1_w"].shape[1]
    H = params["w_hh_t"].shape[0]
    w_ih = params["w_ih_t"].astype(jnp.float32)
    w_hh = params["w_hh_t"].astype(jnp.float32)

    y1 = jnp.maximum(x.reshape(B * S * K, F) @ params["fc1_w"] + params["fc1_b"], 0.0)
    y1 = y1.reshape(B, S, K * H1)
    x_tm = jnp.transpose(y1, (1, 0, 2))

    def step(carry, x_t):
        h, c = carry
        gates = x_t @ w_ih + h @ w_hh + params["lstm_b"]
        i = jax.nn.sigmoid(gates[:, 0 * H:1 * H])
        f = jax.nn.sigmoid(gates[:, 1 * H:2 * H])
        g = jnp.tanh(gates[:, 2 * H:3 * H])
        o = jax.nn.sigmoid(gates[:, 3 * H:4 * H])
        c = f * c + i * g
        h = o * jnp.tanh(c)
        return (h, c), None

    init = (jnp.zeros((B, H), jnp.float32), jnp.zeros((B, H), jnp.float32))
    (h_last, _), _ = jax.lax.scan(step, init, x_tm)
    return h_last @ params["fc2_w"] + params["fc2_b"]


# ----------------------------------- main -------------------------------------------

if __name__ == "__main__":
    key = jax.random.PRNGKey(0)
    pkey, xkey = jax.random.split(key)

    feature_size, k, hidden_dim1, hidden_dim2, out_dim = 32, 5, 8, 128, 1
    batch, seq = 2, 8

    params = init_readout_params(pkey, feature_size, k, hidden_dim1, hidden_dim2, out_dim)
    x = jax.random.normal(xkey, (batch, seq, k, feature_size), jnp.float32)

    out = jax.block_until_ready(readout_forward(params, x))
    ref = jax.block_until_ready(readout_reference(params, x))

    assert out.shape == (batch, out_dim), out.shape
    assert jnp.allclose(out, ref, atol=2e-3, rtol=1e-3), (out, ref)
    print("KERNEL_OK")
</pallas_src>

<mosaic_0001>
module attributes {stable_mosaic.version = 11 : i64} {
  func.func @_readout_fused_kernel(%arg0: i32, %arg1: memref<64x160xf32, #tpu.memory_space<vmem>>, %arg2: memref<160x40xf32, #tpu.memory_space<vmem>>, %arg3: memref<1x40xf32, #tpu.memory_space<vmem>>, %arg4: memref<40x512xbf16, #tpu.memory_space<vmem>>, %arg5: memref<128x512xbf16, #tpu.memory_space<any>>, %arg6: memref<1x512xf32, #tpu.memory_space<vmem>>, %arg7: memref<128x1xf32, #tpu.memory_space<vmem>>, %arg8: memref<1x1xf32, #tpu.memory_space<vmem>>, %arg9: memref<8x1xf32, #tpu.memory_space<vmem>>, %arg10: memref<64x512xf32, #tpu.memory_space<vmem>>, %arg11: memref<128x512xbf16, #tpu.memory_space<vmem>>, %arg12: memref<!tpu.dma_semaphore, #tpu.memory_space<semaphore_mem>>) attributes {dimension_semantics = [#tpu.dimension_semantics<parallel>], iteration_bounds = array<i64: 1>, scalar_prefetch = 0 : i64, scratch_operands = 3 : i64, tpu.core_type = #tpu.core_type<tc>, window_params = [{transform_indices = @transform_0, window_bounds = array<i64: 64, 160>}, {pipeline_mode = #tpu.pipeline_mode<synchronous>, transform_indices = @transform_1, window_bounds = array<i64: 160, 40>}, {pipeline_mode = #tpu.pipeline_mode<synchronous>, transform_indices = @transform_2, window_bounds = array<i64: 1, 40>}, {pipeline_mode = #tpu.pipeline_mode<synchronous>, transform_indices = @transform_3, window_bounds = array<i64: 40, 512>}, {}, {pipeline_mode = #tpu.pipeline_mode<synchronous>, transform_indices = @transform_5, window_bounds = array<i64: 1, 512>}, {pipeline_mode = #tpu.pipeline_mode<synchronous>, transform_indices = @transform_6, window_bounds = array<i64: 128, 1>}, {pipeline_mode = #tpu.pipeline_mode<synchronous>, transform_indices = @transform_7, window_bounds = array<i64: 1, 1>}, {transform_indices = @transform_8, window_bounds = array<i64: 8, 1>}]} {
    tpu.enqueue_dma source(%arg5 : memref<128x512xbf16, #tpu.memory_space<any>>) target(%arg11 : memref<128x512xbf16, #tpu.memory_space<vmem>>) target_semaphore(%arg12 : memref<!tpu.dma_semaphore, #tpu.memory_space<semaphore_mem>>)
    %c0 = arith.constant 0 : index
    %c0_0 = arith.constant 0 : index
    %0 = vector.load %arg1[%c0, %c0_0] : memref<64x160xf32, #tpu.memory_space<vmem>>, vector<64x160xf32>
    %c0_1 = arith.constant 0 : index
    %c0_2 = arith.constant 0 : index
    %1 = vector.load %arg2[%c0_1, %c0_2] : memref<160x40xf32, #tpu.memory_space<vmem>>, vector<160x40xf32>
    %cst = arith.constant dense<0.000000e+00> : vector<64x40xf32>
    %2 = tpu.matmul %0, %1, %cst {dimension_numbers = #tpu.dot_dimension_numbers<[1], [0], [0], [1], [0, 0, 1, 1], [], []>} : vector<64x160xf32>, vector<160x40xf32>, vector<64x40xf32> -> vector<64x40xf32>
    %c0_3 = arith.constant 0 : index
    %c0_4 = arith.constant 0 : index
    %3 = vector.load %arg3[%c0_3, %c0_4] : memref<1x40xf32, #tpu.memory_space<vmem>>, vector<1x40xf32>
    %4 = vector.broadcast %3 : vector<1x40xf32> to vector<64x40xf32>
    %5 = arith.addf %2, %4 : vector<64x40xf32>
    %cst_5 = arith.constant 0.000000e+00 : f32
    %6 = vector.broadcast %cst_5 : f32 to vector<64x40xf32>
    %7 = arith.maximumf %5, %6 : vector<64x40xf32>
    %8 = arith.truncf %7 : vector<64x40xf32> to vector<64x40xbf16>
    %c0_6 = arith.constant 0 : index
    %c0_7 = arith.constant 0 : index
    %9 = vector.load %arg4[%c0_6, %c0_7] : memref<40x512xbf16, #tpu.memory_space<vmem>>, vector<40x512xbf16>
    %cst_8 = arith.constant dense<0.000000e+00> : vector<64x512xf32>
    %10 = tpu.matmul %8, %9, %cst_8 {dimension_numbers = #tpu.dot_dimension_numbers<[1], [0], [0], [1], [0, 0, 1, 1], [], []>} : vector<64x40xbf16>, vector<40x512xbf16>, vector<64x512xf32> -> vector<64x512xf32>
    %c0_9 = arith.constant 0 : index
    %c0_10 = arith.constant 0 : index
    %11 = vector.load %arg6[%c0_9, %c0_10] : memref<1x512xf32, #tpu.memory_space<vmem>>, vector<1x512xf32>
    %12 = vector.broadcast %11 : vector<1x512xf32> to vector<64x512xf32>
    %13 = arith.addf %10, %12 : vector<64x512xf32>
    %c0_11 = arith.constant 0 : index
    %c0_12 = arith.constant 0 : index
    %14 = vector.load %arg10[%c0_11, %c0_12] : memref<64x512xf32, #tpu.memory_space<vmem>>, vector<64x512xf32>
    tpu.vector_store %arg10[%c0_11, %c0_12], %13 {strides = array<i32>} : memref<64x512xf32, #tpu.memory_space<vmem>>, vector<64x512xf32>,
    tpu.wait_dma2 semaphore(%arg12 : memref<!tpu.dma_semaphore, #tpu.memory_space<semaphore_mem>>) src(%arg5 : memref<128x512xbf16, #tpu.memory_space<any>>) dst(%arg11 : memref<128x512xbf16, #tpu.memory_space<vmem>>)
    %cst_13 = arith.constant 0.000000e+00 : f32
    %15 = vector.broadcast %cst_13 : f32 to vector<8x128xf32>
    %cst_14 = arith.constant 0.000000e+00 : f32
    %16 = vector.broadcast %cst_14 : f32 to vector<8x128xf32>
    %c0_15 = arith.constant 0 : index
    %c0_16 = arith.constant 0 : index
    %17 = vector.load %arg10[%c0_15, %c0_16] : memref<64x512xf32, #tpu.memory_space<vmem>>, vector<8x512xf32>
    %18 = arith.truncf %15 : vector<8x128xf32> to vector<8x128xbf16>
    %c0_17 = arith.constant 0 : index
    %c0_18 = arith.constant 0 : index
    %19 = vector.load %arg11[%c0_17, %c0_18] : memref<128x512xbf16, #tpu.memory_space<vmem>>, vector<128x512xbf16>
    %cst_19 = arith.constant dense<0.000000e+00> : vector<8x512xf32>
    %20 = tpu.matmul %18, %19, %cst_19 {dimension_numbers = #tpu.dot_dimension_numbers<[1], [0], [0], [1], [0, 0, 1, 1], [], []>} : vector<8x128xbf16>, vector<128x512xbf16>, vector<8x512xf32> -> vector<8x512xf32>
    %21 = arith.addf %17, %20 : vector<8x512xf32>
    %22 = vector.extract_strided_slice %21 {offsets = [0, 0], sizes = [8, 128], strides = [1, 1]} : vector<8x512xf32> to vector<8x128xf32>
    %23 = arith.negf %22 : vector<8x128xf32>
    %24 = math.exp %23 : vector<8x128xf32>
    %cst_20 = arith.constant 1.000000e+00 : f32
    %25 = vector.broadcast %cst_20 : f32 to vector<8x128xf32>
    %26 = arith.addf %25, %24 : vector<8x128xf32>
    %27 = arith.divf %25, %26 : vector<8x128xf32>
    %28 = vector.extract_strided_slice %21 {offsets = [0, 128], sizes = [8, 128], strides = [1, 1]} : vector<8x512xf32> to vector<8x128xf32>
    %29 = arith.negf %28 : vector<8x128xf32>
    %30 = math.exp %29 : vector<8x128xf32>
    %cst_21 = arith.constant 1.000000e+00 : f32
    %31 = vector.broadcast %cst_21 : f32 to vector<8x128xf32>
    %32 = arith.addf %31, %30 : vector<8x128xf32>
    %33 = arith.divf %31, %32 : vector<8x128xf32>
    %34 = vector.extract_strided_slice %21 {offsets = [0, 256], sizes = [8, 128], strides = [1, 1]} : vector<8x512xf32> to vector<8x128xf32>
    %35 = math.tanh %34 : vector<8x128xf32>
    %36 = vector.extract_strided_slice %21 {offsets = [0, 384], sizes = [8, 128], strides = [1, 1]} : vector<8x512xf32> to vector<8x128xf32>
    %37 = arith.negf %36 : vector<8x128xf32>
    %38 = math.exp %37 : vector<8x128xf32>
    %cst_22 = arith.constant 1.000000e+00 : f32
    %39 = vector.broadcast %cst_22 : f32 to vector<8x128xf32>
    %40 = arith.addf %39, %38 : vector<8x128xf32>
    %41 = arith.divf %39, %40 : vector<8x128xf32>
    %42 = arith.mulf %33, %16 : vector<8x128xf32>
    %43 = arith.mulf %27, %35 : vector<8x128xf32>
    %44 = arith.addf %42, %43 : vector<8x128xf32>
    %45 = math.tanh %44 : vector<8x128xf32>
    %46 = arith.mulf %41, %45 : vector<8x128xf32>
    %c8 = arith.constant 8 : index
    %c0_23 = arith.constant 0 : index
    %47 = vector.load %arg10[%c8, %c0_23] : memref<64x512xf32, #tpu.memory_space<vmem>>, vector<8x512xf32>
    %48 = arith.truncf %46 : vector<8x128xf32> to vector<8x128xbf16>
    %c0_24 = arith.constant 0 : index
    %c0_25 = arith.constant 0 : index
    %49 = vector.load %arg11[%c0_24, %c0_25] : memref<128x512xbf16, #tpu.memory_space<vmem>>, vector<128x512xbf16>
    %cst_26 = arith.constant dense<0.000000e+00> : vector<8x512xf32>
    %50 = tpu.matmul %48, %49, %cst_26 {dimension_numbers = #tpu.dot_dimension_numbers<[1], [0], [0], [1], [0, 0, 1, 1], [], []>} : vector<8x128xbf16>, vector<128x512xbf16>, vector<8x512xf32> -> vector<8x512xf32>
    %51 = arith.addf %47, %50 : vector<8x512xf32>
    %52 = vector.extract_strided_slice %51 {offsets = [0, 0], sizes = [8, 128], strides = [1, 1]} : vector<8x512xf32> to vector<8x128xf32>
    %53 = arith.negf %52 : vector<8x128xf32>
    %54 = math.exp %53 : vector<8x128xf32>
    %cst_27 = arith.constant 1.000000e+00 : f32
    %55 = vector.broadcast %cst_27 : f32 to vector<8x128xf32>
    %56 = arith.addf %55, %54 : vector<8x128xf32>
    %57 = arith.divf %55, %56 : vector<8x128xf32>
    %58 = vector.extract_strided_slice %51 {offsets = [0, 128], sizes = [8, 128], strides = [1, 1]} : vector<8x512xf32> to vector<8x128xf32>
    %59 = arith.negf %58 : vector<8x128xf32>
    %60 = math.exp %59 : vector<8x128xf32>
    %cst_28 = arith.constant 1.000000e+00 : f32
    %61 = vector.broadcast %cst_28 : f32 to vector<8x128xf32>
    %62 = arith.addf %61, %60 : vector<8x128xf32>
    %63 = arith.divf %61, %62 : vector<8x128xf32>
    %64 = vector.extract_strided_slice %51 {offsets = [0, 256], sizes = [8, 128], strides = [1, 1]} : vector<8x512xf32> to vector<8x128xf32>
    %65 = math.tanh %64 : vector<8x128xf32>
    %66 = vector.extract_strided_slice %51 {offsets = [0, 384], sizes = [8, 128], strides = [1, 1]} : vector<8x512xf32> to vector<8x128xf32>
    %67 = arith.negf %66 : vector<8x128xf32>
    %68 = math.exp %67 : vector<8x128xf32>
    %cst_29 = arith.constant 1.000000e+00 : f32
    %69 = vector.broadcast %cst_29 : f32 to vector<8x128xf32>
    %70 = arith.addf %69, %68 : vector<8x128xf32>
    %71 = arith.divf %69, %70 : vector<8x128xf32>
    %72 = arith.mulf %63, %44 : vector<8x128xf32>
    %73 = arith.mulf %57, %65 : vector<8x128xf32>
    %74 = arith.addf %72, %73 : vector<8x128xf32>
    %75 = math.tanh %74 : vector<8x128xf32>
    %76 = arith.mulf %71, %75 : vector<8x128xf32>
    %c16 = arith.constant 16 : index
    %c0_30 = arith.constant 0 : index
    %77 = vector.load %arg10[%c16, %c0_30] : memref<64x512xf32, #tpu.memory_space<vmem>>, vector<8x512xf32>
    %78 = arith.truncf %76 : vector<8x128xf32> to vector<8x128xbf16>
    %c0_31 = arith.constant 0 : index
    %c0_32 = arith.constant 0 : index
    %79 = vector.load %arg11[%c0_31, %c0_32] : memref<128x512xbf16, #tpu.memory_space<vmem>>, vector<128x512xbf16>
    %cst_33 = arith.constant dense<0.000000e+00> : vector<8x512xf32>
    %80 = tpu.matmul %78, %79, %cst_33 {dimension_numbers = #tpu.dot_dimension_numbers<[1], [0], [0], [1], [0, 0, 1, 1], [], []>} : vector<8x128xbf16>, vector<128x512xbf16>, vector<8x512xf32> -> vector<8x512xf32>
    %81 = arith.addf %77, %80 : vector<8x512xf32>
    %82 = vector.extract_strided_slice %81 {offsets = [0, 0], sizes = [8, 128], strides = [1, 1]} : vector<8x512xf32> to vector<8x128xf32>
    %83 = arith.negf %82 : vector<8x128xf32>
    %84 = math.exp %83 : vector<8x128xf32>
    %cst_34 = arith.constant 1.000000e+00 : f32
    %85 = vector.broadcast %cst_34 : f32 to vector<8x128xf32>
    %86 = arith.addf %85, %84 : vector<8x128xf32>
    %87 = arith.divf %85, %86 : vector<8x128xf32>
    %88 = vector.extract_strided_slice %81 {offsets = [0, 128], sizes = [8, 128], strides = [1, 1]} : vector<8x512xf32> to vector<8x128xf32>
    %89 = arith.negf %88 : vector<8x128xf32>
    %90 = math.exp %89 : vector<8x128xf32>
    %cst_35 = arith.constant 1.000000e+00 : f32
    %91 = vector.broadcast %cst_35 : f32 to vector<8x128xf32>
    %92 = arith.addf %91, %90 : vector<8x128xf32>
    %93 = arith.divf %91, %92 : vector<8x128xf32>
    %94 = vector.extract_strided_slice %81 {offsets = [0, 256], sizes = [8, 128], strides = [1, 1]} : vector<8x512xf32> to vector<8x128xf32>
    %95 = math.tanh %94 : vector<8x128xf32>
    %96 = vector.extract_strided_slice %81 {offsets = [0, 384], sizes = [8, 128], strides = [1, 1]} : vector<8x512xf32> to vector<8x128xf32>
    %97 = arith.negf %96 : vector<8x128xf32>
    %98 = math.exp %97 : vector<8x128xf32>
    %cst_36 = arith.constant 1.000000e+00 : f32
    %99 = vector.broadcast %cst_36 : f32 to vector<8x128xf32>
    %100 = arith.addf %99, %98 : vector<8x128xf32>
    %101 = arith.divf %99, %100 : vector<8x128xf32>
    %102 = arith.mulf %93, %74 : vector<8x128xf32>
    %103 = arith.mulf %87, %95 : vector<8x128xf32>
    %104 = arith.addf %102, %103 : vector<8x128xf32>
    %105 = math.tanh %104 : vector<8x128xf32>
    %106 = arith.mulf %101, %105 : vector<8x128xf32>
    %c24 = arith.constant 24 : index
    %c0_37 = arith.constant 0 : index
    %107 = vector.load %arg10[%c24, %c0_37] : memref<64x512xf32, #tpu.memory_space<vmem>>, vector<8x512xf32>
    %108 = arith.truncf %106 : vector<8x128xf32> to vector<8x128xbf16>
    %c0_38 = arith.constant 0 : index
    %c0_39 = arith.constant 0 : index
    %109 = vector.load %arg11[%c0_38, %c0_39] : memref<128x512xbf16, #tpu.memory_space<vmem>>, vector<128x512xbf16>
    %cst_40 = arith.constant dense<0.000000e+00> : vector<8x512xf32>
    %110 = tpu.matmul %108, %109, %cst_40 {dimension_numbers = #tpu.dot_dimension_numbers<[1], [0], [0], [1], [0, 0, 1, 1], [], []>} : vector<8x128xbf16>, vector<128x512xbf16>, vector<8x512xf32> -> vector<8x512xf32>
    %111 = arith.addf %107, %110 : vector<8x512xf32>
    %112 = vector.extract_strided_slice %111 {offsets = [0, 0], sizes = [8, 128], strides = [1, 1]} : vector<8x512xf32> to vector<8x128xf32>
    %113 = arith.negf %112 : vector<8x128xf32>
    %114 = math.exp %113 : vector<8x128xf32>
    %cst_41 = arith.constant 1.000000e+00 : f32
    %115 = vector.broadcast %cst_41 : f32 to vector<8x128xf32>
    %116 = arith.addf %115, %114 : vector<8x128xf32>
    %117 = arith.divf %115, %116 : vector<8x128xf32>
    %118 = vector.extract_strided_slice %111 {offsets = [0, 128], sizes = [8, 128], strides = [1, 1]} : vector<8x512xf32> to vector<8x128xf32>
    %119 = arith.negf %118 : vector<8x128xf32>
    %120 = math.exp %119 : vector<8x128xf32>
    %cst_42 = arith.constant 1.000000e+00 : f32
    %121 = vector.broadcast %cst_42 : f32 to vector<8x128xf32>
    %122 = arith.addf %121, %120 : vector<8x128xf32>
    %123 = arith.divf %121, %122 : vector<8x128xf32>
    %124 = vector.extract_strided_slice %111 {offsets = [0, 256], sizes = [8, 128], strides = [1, 1]} : vector<8x512xf32> to vector<8x128xf32>
    %125 = math.tanh %124 : vector<8x128xf32>
    %126 = vector.extract_strided_slice %111 {offsets = [0, 384], sizes = [8, 128], strides = [1, 1]} : vector<8x512xf32> to vector<8x128xf32>
    %127 = arith.negf %126 : vector<8x128xf32>
    %128 = math.exp %127 : vector<8x128xf32>
    %cst_43 = arith.constant 1.000000e+00 : f32
    %129 = vector.broadcast %cst_43 : f32 to vector<8x128xf32>
    %130 = arith.addf %129, %128 : vector<8x128xf32>
    %131 = arith.divf %129, %130 : vector<8x128xf32>
    %132 = arith.mulf %123, %104 : vector<8x128xf32>
    %133 = arith.mulf %117, %125 : vector<8x128xf32>
    %134 = arith.addf %132, %133 : vector<8x128xf32>
    %135 = math.tanh %134 : vector<8x128xf32>
    %136 = arith.mulf %131, %135 : vector<8x128xf32>
    %c32 = arith.constant 32 : index
    %c0_44 = arith.constant 0 : index
    %137 = vector.load %arg10[%c32, %c0_44] : memref<64x512xf32, #tpu.memory_space<vmem>>, vector<8x512xf32>
    %138 = arith.truncf %136 : vector<8x128xf32> to vector<8x128xbf16>
    %c0_45 = arith.constant 0 : index
    %c0_46 = arith.constant 0 : index
    %139 = vector.load %arg11[%c0_45, %c0_46] : memref<128x512xbf16, #tpu.memory_space<vmem>>, vector<128x512xbf16>
    %cst_47 = arith.constant dense<0.000000e+00> : vector<8x512xf32>
    %140 = tpu.matmul %138, %139, %cst_47 {dimension_numbers = #tpu.dot_dimension_numbers<[1], [0], [0], [1], [0, 0, 1, 1], [], []>} : vector<8x128xbf16>, vector<128x512xbf16>, vector<8x512xf32> -> vector<8x512xf32>
    %141 = arith.addf %137, %140 : vector<8x512xf32>
    %142 = vector.extract_strided_slice %141 {offsets = [0, 0], sizes = [8, 128], strides = [1, 1]} : vector<8x512xf32> to vector<8x128xf32>
    %143 = arith.negf %142 : vector<8x128xf32>
    %144 = math.exp %143 : vector<8x128xf32>
    %cst_48 = arith.constant 1.000000e+00 : f32
    %145 = vector.broadcast %cst_48 : f32 to vector<8x128xf32>
    %146 = arith.addf %145, %144 : vector<8x128xf32>
    %147 = arith.divf %145, %146 : vector<8x128xf32>
    %148 = vector.extract_strided_slice %141 {offsets = [0, 128], sizes = [8, 128], strides = [1, 1]} : vector<8x512xf32> to vector<8x128xf32>
    %149 = arith.negf %148 : vector<8x128xf32>
    %150 = math.exp %149 : vector<8x128xf32>
    %cst_49 = arith.constant 1.000000e+00 : f32
    %151 = vector.broadcast %cst_49 : f32 to vector<8x128xf32>
    %152 = arith.addf %151, %150 : vector<8x128xf32>
    %153 = arith.divf %151, %152 : vector<8x128xf32>
    %154 = vector.extract_strided_slice %141 {offsets = [0, 256], sizes = [8, 128], strides = [1, 1]} : vector<8x512xf32> to vector<8x128xf32>
    %155 = math.tanh %154 : vector<8x128xf32>
    %156 = vector.extract_strided_slice %141 {offsets = [0, 384], sizes = [8, 128], strides = [1, 1]} : vector<8x512xf32> to vector<8x128xf32>
    %157 = arith.negf %156 : vector<8x128xf32>
    %158 = math.exp %157 : vector<8x128xf32>
    %cst_50 = arith.constant 1.000000e+00 : f32
    %159 = vector.broadcast %cst_50 : f32 to vector<8x128xf32>
    %160 = arith.addf %159, %158 : vector<8x128xf32>
    %161 = arith.divf %159, %160 : vector<8x128xf32>
    %162 = arith.mulf %153, %134 : vector<8x128xf32>
    %163 = arith.mulf %147, %155 : vector<8x128xf32>
    %164 = arith.addf %162, %163 : vector<8x128xf32>
    %165 = math.tanh %164 : vector<8x128xf32>
    %166 = arith.mulf %161, %165 : vector<8x128xf32>
    %c40 = arith.constant 40 : index
    %c0_51 = arith.constant 0 : index
    %167 = vector.load %arg10[%c40, %c0_51] : memref<64x512xf32, #tpu.memory_space<vmem>>, vector<8x512xf32>
    %168 = arith.truncf %166 : vector<8x128xf32> to vector<8x128xbf16>
    %c0_52 = arith.constant 0 : index
    %c0_53 = arith.constant 0 : index
    %169 = vector.load %arg11[%c0_52, %c0_53] : memref<128x512xbf16, #tpu.memory_space<vmem>>, vector<128x512xbf16>
    %cst_54 = arith.constant dense<0.000000e+00> : vector<8x512xf32>
    %170 = tpu.matmul %168, %169, %cst_54 {dimension_numbers = #tpu.dot_dimension_numbers<[1], [0], [0], [1], [0, 0, 1, 1], [], []>} : vector<8x128xbf16>, vector<128x512xbf16>, vector<8x512xf32> -> vector<8x512xf32>
    %171 = arith.addf %167, %170 : vector<8x512xf32>
    %172 = vector.extract_strided_slice %171 {offsets = [0, 0], sizes = [8, 128], strides = [1, 1]} : vector<8x512xf32> to vector<8x128xf32>
    %173 = arith.negf %172 : vector<8x128xf32>
    %174 = math.exp %173 : vector<8x128xf32>
    %cst_55 = arith.constant 1.000000e+00 : f32
    %175 = vector.broadcast %cst_55 : f32 to vector<8x128xf32>
    %176 = arith.addf %175, %174 : vector<8x128xf32>
    %177 = arith.divf %175, %176 : vector<8x128xf32>
    %178 = vector.extract_strided_slice %171 {offsets = [0, 128], sizes = [8, 128], strides = [1, 1]} : vector<8x512xf32> to vector<8x128xf32>
    %179 = arith.negf %178 : vector<8x128xf32>
    %180 = math.exp %179 : vector<8x128xf32>
    %cst_56 = arith.constant 1.000000e+00 : f32
    %181 = vector.broadcast %cst_56 : f32 to vector<8x128xf32>
    %182 = arith.addf %181, %180 : vector<8x128xf32>
    %183 = arith.divf %181, %182 : vector<8x128xf32>
    %184 = vector.extract_strided_slice %171 {offsets = [0, 256], sizes = [8, 128], strides = [1, 1]} : vector<8x512xf32> to vector<8x128xf32>
    %185 = math.tanh %184 : vector<8x128xf32>
    %186 = vector.extract_strided_slice %171 {offsets = [0, 384], sizes = [8, 128], strides = [1, 1]} : vector<8x512xf32> to vector<8x128xf32>
    %187 = arith.negf %186 : vector<8x128xf32>
    %188 = math.exp %187 : vector<8x128xf32>
    %cst_57 = arith.constant 1.000000e+00 : f32
    %189 = vector.broadcast %cst_57 : f32 to vector<8x128xf32>
    %190 = arith.addf %189, %188 : vector<8x128xf32>
    %191 = arith.divf %189, %190 : vector<8x128xf32>
    %192 = arith.mulf %183, %164 : vector<8x128xf32>
    %193 = arith.mulf %177, %185 : vector<8x128xf32>
    %194 = arith.addf %192, %193 : vector<8x128xf32>
    %195 = math.tanh %194 : vector<8x128xf32>
    %196 = arith.mulf %191, %195 : vector<8x128xf32>
    %c48 = arith.constant 48 : index
    %c0_58 = arith.constant 0 : index
    %197 = vector.load %arg10[%c48, %c0_58] : memref<64x512xf32, #tpu.memory_space<vmem>>, vector<8x512xf32>
    %198 = arith.truncf %196 : vector<8x128xf32> to vector<8x128xbf16>
    %c0_59 = arith.constant 0 : index
    %c0_60 = arith.constant 0 : index
    %199 = vector.load %arg11[%c0_59, %c0_60] : memref<128x512xbf16, #tpu.memory_space<vmem>>, vector<128x512xbf16>
    %cst_61 = arith.constant dense<0.000000e+00> : vector<8x512xf32>
    %200 = tpu.matmul %198, %199, %cst_61 {dimension_numbers = #tpu.dot_dimension_numbers<[1], [0], [0], [1], [0, 0, 1, 1], [], []>} : vector<8x128xbf16>, vector<128x512xbf16>, vector<8x512xf32> -> vector<8x512xf32>
    %201 = arith.addf %197, %200 : vector<8x512xf32>
    %202 = vector.extract_strided_slice %201 {offsets = [0, 0], sizes = [8, 128], strides = [1, 1]} : vector<8x512xf32> to vector<8x128xf32>
    %203 = arith.negf %202 : vector<8x128xf32>
    %204 = math.exp %203 : vector<8x128xf32>
    %cst_62 = arith.constant 1.000000e+00 : f32
    %205 = vector.broadcast %cst_62 : f32 to vector<8x128xf32>
    %206 = arith.addf %205, %204 : vector<8x128xf32>
    %207 = arith.divf %205, %206 : vector<8x128xf32>
    %208 = vector.extract_strided_slice %201 {offsets = [0, 128], sizes = [8, 128], strides = [1, 1]} : vector<8x512xf32> to vector<8x128xf32>
    %209 = arith.negf %208 : vector<8x128xf32>
    %210 = math.exp %209 : vector<8x128xf32>
    %cst_63 = arith.constant 1.000000e+00 : f32
    %211 = vector.broadcast %cst_63 : f32 to vector<8x128xf32>
    %212 = arith.addf %211, %210 : vector<8x128xf32>
    %213 = arith.divf %211, %212 : vector<8x128xf32>
    %214 = vector.extract_strided_slice %201 {offsets = [0, 256], sizes = [8, 128], strides = [1, 1]} : vector<8x512xf32> to vector<8x128xf32>
    %215 = math.tanh %214 : vector<8x128xf32>
    %216 = vector.extract_strided_slice %201 {offsets = [0, 384], sizes = [8, 128], strides = [1, 1]} : vector<8x512xf32> to vector<8x128xf32>
    %217 = arith.negf %216 : vector<8x128xf32>
    %218 = math.exp %217 : vector<8x128xf32>
    %cst_64 = arith.constant 1.000000e+00 : f32
    %219 = vector.broadcast %cst_64 : f32 to vector<8x128xf32>
    %220 = arith.addf %219, %218 : vector<8x128xf32>
    %221 = arith.divf %219, %220 : vector<8x128xf32>
    %222 = arith.mulf %213, %194 : vector<8x128xf32>
    %223 = arith.mulf %207, %215 : vector<8x128xf32>
    %224 = arith.addf %222, %223 : vector<8x128xf32>
    %225 = math.tanh %224 : vector<8x128xf32>
    %226 = arith.mulf %221, %225 : vector<8x128xf32>
    %c56 = arith.constant 56 : index
    %c0_65 = arith.constant 0 : index
    %227 = vector.load %arg10[%c56, %c0_65] : memref<64x512xf32, #tpu.memory_space<vmem>>, vector<8x512xf32>
    %228 = arith.truncf %226 : vector<8x128xf32> to vector<8x128xbf16>
    %c0_66 = arith.constant 0 : index
    %c0_67 = arith.constant 0 : index
    %229 = vector.load %arg11[%c0_66, %c0_67] : memref<128x512xbf16, #tpu.memory_space<vmem>>, vector<128x512xbf16>
    %cst_68 = arith.constant dense<0.000000e+00> : vector<8x512xf32>
    %230 = tpu.matmul %228, %229, %cst_68 {dimension_numbers = #tpu.dot_dimension_numbers<[1], [0], [0], [1], [0, 0, 1, 1], [], []>} : vector<8x128xbf16>, vector<128x512xbf16>, vector<8x512xf32> -> vector<8x512xf32>
    %231 = arith.addf %227, %230 : vector<8x512xf32>
    %232 = vector.extract_strided_slice %231 {offsets = [0, 0], sizes = [8, 128], strides = [1, 1]} : vector<8x512xf32> to vector<8x128xf32>
    %233 = arith.negf %232 : vector<8x128xf32>
    %234 = math.exp %233 : vector<8x128xf32>
    %cst_69 = arith.constant 1.000000e+00 : f32
    %235 = vector.broadcast %cst_69 : f32 to vector<8x128xf32>
    %236 = arith.addf %235, %234 : vector<8x128xf32>
    %237 = arith.divf %235, %236 : vector<8x128xf32>
    %238 = vector.extract_strided_slice %231 {offsets = [0, 128], sizes = [8, 128], strides = [1, 1]} : vector<8x512xf32> to vector<8x128xf32>
    %239 = arith.negf %238 : vector<8x128xf32>
    %240 = math.exp %239 : vector<8x128xf32>
    %cst_70 = arith.constant 1.000000e+00 : f32
    %241 = vector.broadcast %cst_70 : f32 to vector<8x128xf32>
    %242 = arith.addf %241, %240 : vector<8x128xf32>
    %243 = arith.divf %241, %242 : vector<8x128xf32>
    %244 = vector.extract_strided_slice %231 {offsets = [0, 256], sizes = [8, 128], strides = [1, 1]} : vector<8x512xf32> to vector<8x128xf32>
    %245 = math.tanh %244 : vector<8x128xf32>
    %246 = vector.extract_strided_slice %231 {offsets = [0, 384], sizes = [8, 128], strides = [1, 1]} : vector<8x512xf32> to vector<8x128xf32>
    %247 = arith.negf %246 : vector<8x128xf32>
    %248 = math.exp %247 : vector<8x128xf32>
    %cst_71 = arith.constant 1.000000e+00 : f32
    %249 = vector.broadcast %cst_71 : f32 to vector<8x128xf32>
    %250 = arith.addf %249, %248 : vector<8x128xf32>
    %251 = arith.divf %249, %250 : vector<8x128xf32>
    %252 = arith.mulf %243, %224 : vector<8x128xf32>
    %253 = arith.mulf %237, %245 : vector<8x128xf32>
    %254 = arith.addf %252, %253 : vector<8x128xf32>
    %255 = math.tanh %254 : vector<8x128xf32>
    %256 = arith.mulf %251, %255 : vector<8x128xf32>
    %c0_72 = arith.constant 0 : index
    %c0_73 = arith.constant 0 : index
    %257 = vector.load %arg7[%c0_72, %c0_73] : memref<128x1xf32, #tpu.memory_space<vmem>>, vector<128x1xf32>
    %cst_74 = arith.constant dense<0.000000e+00> : vector<8x1xf32>
    %258 = tpu.matmul %256, %257, %cst_74 {dimension_numbers = #tpu.dot_dimension_numbers<[1], [0], [0], [1], [0, 0, 1, 1], [], []>} : vector<8x128xf32>, vector<128x1xf32>, vector<8x1xf32> -> vector<8x1xf32>
    %c0_75 = arith.constant 0 : index
    %c0_76 = arith.constant 0 : index
    %259 = vector.load %arg8[%c0_75, %c0_76] : memref<1x1xf32, #tpu.memory_space<vmem>>, vector<1x1xf32>
    %260 = vector.broadcast %259 : vector<1x1xf32> to vector<8x1xf32>
    %261 = arith.addf %258, %260 : vector<8x1xf32>
    %c0_77 = arith.constant 0 : index
    %c0_78 = arith.constant 0 : index
    %262 = vector.load %arg9[%c0_77, %c0_78] : memref<8x1xf32, #tpu.memory_space<vmem>>, vector<8x1xf32>
    tpu.vector_store %arg9[%c0_77, %c0_78], %261 {strides = array<i32>} : memref<8x1xf32, #tpu.memory_space<vmem>>, vector<8x1xf32>,
    return
  }
  func.func @transform_0(%arg0: i32) -> (i32, i32) {
    %c0_i32 = arith.constant 0 : i32
    %c0_i32_0 = arith.constant 0 : i32
    return %arg0, %c0_i32 : i32, i32
  }
  func.func @transform_1(%arg0: i32) -> (i32, i32) {
    %c0_i32 = arith.constant 0 : i32
    %c0_i32_0 = arith.constant 0 : i32
    %c0_i32_1 = arith.constant 0 : i32
    return %c0_i32, %c0_i32_0 : i32, i32
  }
  func.func @transform_2(%arg0: i32) -> (i32, i32) {
    %c0_i32 = arith.constant 0 : i32
    %c0_i32_0 = arith.constant 0 : i32
    %c0_i32_1 = arith.constant 0 : i32
    return %c0_i32, %c0_i32_0 : i32, i32
  }
  func.func @transform_3(%arg0: i32) -> (i32, i32) {
    %c0_i32 = arith.constant 0 : i32
    %c0_i32_0 = arith.constant 0 : i32
    %c0_i32_1 = arith.constant 0 : i32
    return %c0_i32, %c0_i32_0 : i32, i32
  }
  func.func @transform_5(%arg0: i32) -> (i32, i32) {
    %c0_i32 = arith.constant 0 : i32
    %c0_i32_0 = arith.constant 0 : i32
    %c0_i32_1 = arith.constant 0 : i32
    return %c0_i32, %c0_i32_0 : i32, i32
  }
  func.func @transform_6(%arg0: i32) -> (i32, i32) {
    %c0_i32 = arith.constant 0 : i32
    %c0_i32_0 = arith.constant 0 : i32
    %c0_i32_1 = arith.constant 0 : i32
    return %c0_i32, %c0_i32_0 : i32, i32
  }
  func.func @transform_7(%arg0: i32) -> (i32, i32) {
    %c0_i32 = arith.constant 0 : i32
    %c0_i32_0 = arith.constant 0 : i32
    %c0_i32_1 = arith.constant 0 : i32
    return %c0_i32, %c0_i32_0 : i32, i32
  }
  func.func @transform_8(%arg0: i32) -> (i32, i32) {
    %c0_i32 = arith.constant 0 : i32
    %c0_i32_0 = arith.constant 0 : i32
    return %arg0, %c0_i32 : i32, i32
  }
}

</mosaic_0001>

<bundles_post_ra>
// kernel: readout_forward.1
= control target key start
LH: loop header
LB: loop body
LE: loop exit
PB: predicated region body
PF: predicated region fallthrough
CT: control target
= control target key end

     0   :  { %s3118_s0 = inlined_call_operand.vmem [shape: f32[64,160], index: 0, kind: input, shape index: {}]   ;;  %s3119_s1 = inlined_call_operand.vmem [shape: f32[160,40], index: 1, kind: input, shape index: {}]   ;;  %s3120_s2 = inlined_call_operand.vmem [shape: f32[1,40], index: 2, kind: input, shape index: {}]   ;;  %s3121_s3 = inlined_call_operand.vmem [shape: bf16[40,512], index: 3, kind: input, shape index: {}]   ;;  %s3122_s5 = inlined_call_operand.vmem [shape: f32[1,512], index: 5, kind: input, shape index: {}]   ;;  %s3123_s6 = inlined_call_operand.vmem [shape: f32[128,1], index: 6, kind: input, shape index: {}]   ;;  %s3124_s7 = inlined_call_operand.<no memory space> [shape: f32[1,1], index: 7, kind: input, shape index: {}]   ;;  %s3125_s8 = inlined_call_operand.vmem [shape: f32[8,1], index: 8, kind: output, shape index: {}]   ;;  %s3126_s4 = inlined_call_operand.vmem [shape: bf16[128,512], index: 4, kind: input, shape index: {}]  }
   0x1   :  { %v13_v0 = vstv %s3124_s7  ;;  %v47_v1 = vld [vmem:[%s3126_s4] sm:$0xf]  ;;  %v49_v2 = vld [vmem:[%s3126_s4 + $0x10] sm:$0xf]  ;;  %v51_v3 = vld [vmem:[%s3126_s4 + $0x4] sm:$0xf] }
   0x2   :  { %14 = vst [vmem:[#allocation5] sm:$0x1] %v13_v0  ;;  %48 = vst [vmem:[#allocation3] sm:$0xf] %v47_v1  ;;  %v53_v4 = vld [vmem:[%s3126_s4 + $0x14] sm:$0xf] }
   0x3   :  { %50 = vst [vmem:[#allocation3 + $0x4] sm:$0xf] %v49_v2  ;;  %52 = vst [vmem:[#allocation3 + $0x8] sm:$0xf] %v51_v3  ;;  %v55_v5 = vld [vmem:[%s3126_s4 + $0x8] sm:$0xf] }
   0x4   :  { %v57_v6 = vld [vmem:[%s3126_s4 + $0x18] sm:$0xf]  ;;  %54 = vst [vmem:[#allocation3 + $0xc] sm:$0xf] %v53_v4  ;;  %56 = vst [vmem:[#allocation3 + $0x10] sm:$0xf] %v55_v5 }
   0x5   :  { %58 = vst [vmem:[#allocation3 + $0x14] sm:$0xf] %v57_v6  ;;  %v59_v7 = vld [vmem:[%s3126_s4 + $0xc] sm:$0xf]  ;;  %v61_v8 = vld [vmem:[%s3126_s4 + $0x1c] sm:$0xff]  }
   0x6   :  { %v65_v9 = vld [vmem:[%s3126_s4 + $0x30] sm:$0xf]  ;;  %60 = vst [vmem:[#allocation3 + $0x18] sm:$0xf] %v59_v7  ;;  %62 = vst [vmem:[#allocation3 + $0x1c] sm:$0xff] %v61_v8   ;;  %v77_v15 = vld [vmem:[%s3126_s4 + $0x3c] sm:$0xff]  }
   0x7   :  { %66 = vst [vmem:[#allocation3 + $0x24] sm:$0xf] %v65_v9  ;;  %v67_v10 = vld [vmem:[%s3126_s4 + $0x24] sm:$0xf]  ;;  %v69_v11 = vld [vmem:[%s3126_s4 + $0x34] sm:$0xf] }
   0x8   :  { %v71_v12 = vld [vmem:[%s3126_s4 + $0x28] sm:$0xf]  ;;  %68 = vst [vmem:[#allocation3 + $0x28] sm:$0xf] %v67_v10  ;;  %70 = vst [vmem:[#allocation3 + $0x2c] sm:$0xf] %v69_v11 }
   0x9   :  { %72 = vst [vmem:[#allocation3 + $0x30] sm:$0xf] %v71_v12  ;;  %v73_v13 = vld [vmem:[%s3126_s4 + $0x38] sm:$0xf]  ;;  %v75_v14 = vld [vmem:[%s3126_s4 + $0x2c] sm:$0xf] }
   0xa   :  { %74 = vst [vmem:[#allocation3 + $0x34] sm:$0xf] %v73_v13  ;;  %76 = vst [vmem:[#allocation3 + $0x38] sm:$0xf] %v75_v14  ;;  %v81_v16 = vld [vmem:[%s3126_s4 + $0x50] sm:$0xf] }
   0xb   :  { %78 = vst [vmem:[#allocation3 + $0x3c] sm:$0xff] %v77_v15   ;;  %v83_v17 = vld [vmem:[%s3126_s4 + $0x44] sm:$0xf]  ;;  %v85_v18 = vld [vmem:[%s3126_s4 + $0x54] sm:$0xf]  ;;  %v93_v22 = vld [vmem:[%s3126_s4 + $0x5c] sm:$0xff]  }
   0xc   :  { %82 = vst [vmem:[#allocation3 + $0x44] sm:$0xf] %v81_v16  ;;  %84 = vst [vmem:[#allocation3 + $0x48] sm:$0xf] %v83_v17  ;;  %v87_v19 = vld [vmem:[%s3126_s4 + $0x48] sm:$0xf] }
   0xd   :  { %86 = vst [vmem:[#allocation3 + $0x4c] sm:$0xf] %v85_v18  ;;  %v89_v20 = vld [vmem:[%s3126_s4 + $0x58] sm:$0xf]  ;;  %v91_v21 = vld [vmem:[%s3126_s4 + $0x4c] sm:$0xf] }
   0xe   :  { %88 = vst [vmem:[#allocation3 + $0x50] sm:$0xf] %v87_v19  ;;  %90 = vst [vmem:[#allocation3 + $0x54] sm:$0xf] %v89_v20  ;;  %v97_v23 = vld [vmem:[%s3126_s4 + $0x70] sm:$0xf] }
   0xf   :  { %92 = vst [vmem:[#allocation3 + $0x58] sm:$0xf] %v91_v21  ;;  %v99_v24 = vld [vmem:[%s3126_s4 + $0x64] sm:$0xf]  ;;  %94 = vst [vmem:[#allocation3 + $0x5c] sm:$0xff] %v93_v22   ;;  %v109_v29 = vld [vmem:[%s3126_s4 + $0x7c] sm:$0xff]  }
  0x10   :  { %98 = vst [vmem:[#allocation3 + $0x64] sm:$0xf] %v97_v23  ;;  %100 = vst [vmem:[#allocation3 + $0x68] sm:$0xf] %v99_v24  ;;  %v101_v25 = vld [vmem:[%s3126_s4 + $0x74] sm:$0xf] }
  0x11   :  { %v103_v26 = vld [vmem:[%s3126_s4 + $0x68] sm:$0xf]  ;;  %v105_v27 = vld [vmem:[%s3126_s4 + $0x78] sm:$0xf]  ;;  %102 = vst [vmem:[#allocation3 + $0x6c] sm:$0xf] %v101_v25 }
  0x12   :  { %104 = vst [vmem:[#allocation3 + $0x70] sm:$0xf] %v103_v26  ;;  %106 = vst [vmem:[#allocation3 + $0x74] sm:$0xf] %v105_v27  ;;  %v107_v28 = vld [vmem:[%s3126_s4 + $0x6c] sm:$0xf] }
  0x13   :  { %v113_v30 = vld [vmem:[%s3126_s4 + $0x90] sm:$0xf]  ;;  %108 = vst [vmem:[#allocation3 + $0x78] sm:$0xf] %v107_v28  ;;  %110 = vst [vmem:[#allocation3 + $0x7c] sm:$0xff] %v109_v29   ;;  %v125_v36 = vld [vmem:[%s3126_s4 + $0x9c] sm:$0xff]  }
  0x14   :  { %114 = vst [vmem:[#allocation3 + $0x84] sm:$0xf] %v113_v30  ;;  %v115_v31 = vld [vmem:[%s3126_s4 + $0x84] sm:$0xf]  ;;  %v117_v32 = vld [vmem:[%s3126_s4 + $0x94] sm:$0xf] }
  0x15   :  { %v119_v33 = vld [vmem:[%s3126_s4 + $0x88] sm:$0xf]  ;;  %116 = vst [vmem:[#allocation3 + $0x88] sm:$0xf] %v115_v31  ;;  %118 = vst [vmem:[#allocation3 + $0x8c] sm:$0xf] %v117_v32 }
  0x16   :  { %120 = vst [vmem:[#allocation3 + $0x90] sm:$0xf] %v119_v33  ;;  %v121_v34 = vld [vmem:[%s3126_s4 + $0x98] sm:$0xf]  ;;  %v123_v35 = vld [vmem:[%s3126_s4 + $0x8c] sm:$0xf] }
  0x17   :  { %122 = vst [vmem:[#allocation3 + $0x94] sm:$0xf] %v121_v34  ;;  %124 = vst [vmem:[#allocation3 + $0x98] sm:$0xf] %v123_v35  ;;  %v129_v37 = vld [vmem:[%s3126_s4 + $0xb0] sm:$0xf] }
  0x18   :  { %126 = vst [vmem:[#allocation3 + $0x9c] sm:$0xff] %v125_v36   ;;  %v131_v38 = vld [vmem:[%s3126_s4 + $0xa4] sm:$0xf]  ;;  %v133_v39 = vld [vmem:[%s3126_s4 + $0xb4] sm:$0xf]  ;;  %v141_v43 = vld [vmem:[%s3126_s4 + $0xbc] sm:$0xff]  }
  0x19   :  { %130 = vst [vmem:[#allocation3 + $0xa4] sm:$0xf] %v129_v37  ;;  %132 = vst [vmem:[#allocation3 + $0xa8] sm:$0xf] %v131_v38  ;;  %v135_v40 = vld [vmem:[%s3126_s4 + $0xa8] sm:$0xf] }
  0x1a   :  { %134 = vst [vmem:[#allocation3 + $0xac] sm:$0xf] %v133_v39  ;;  %v137_v41 = vld [vmem:[%s3126_s4 + $0xb8] sm:$0xf]  ;;  %v139_v42 = vld [vmem:[%s3126_s4 + $0xac] sm:$0xf] }
  0x1b   :  { %136 = vst [vmem:[#allocation3 + $0xb0] sm:$0xf] %v135_v40  ;;  %138 = vst [vmem:[#allocation3 + $0xb4] sm:$0xf] %v137_v41  ;;  %v145_v44 = vld [vmem:[%s3126_s4 + $0xd0] sm:$0xf] }
  0x1c   :  { %140 = vst [vmem:[#allocation3 + $0xb8] sm:$0xf] %v139_v42  ;;  %v147_v45 = vld [vmem:[%s3126_s4 + $0xc4] sm:$0xf]  ;;  %142 = vst [vmem:[#allocation3 + $0xbc] sm:$0xff] %v141_v43   ;;  %v157_v50 = vld [vmem:[%s3126_s4 + $0xdc] sm:$0xff]  }
  0x1d   :  { %146 = vst [vmem:[#allocation3 + $0xc4] sm:$0xf] %v145_v44  ;;  %148 = vst [vmem:[#allocation3 + $0xc8] sm:$0xf] %v147_v45  ;;  %v149_v46 = vld [vmem:[%s3126_s4 + $0xd4] sm:$0xf] }
  0x1e   :  { %v151_v47 = vld [vmem:[%s3126_s4 + $0xc8] sm:$0xf]  ;;  %v153_v48 = vld [vmem:[%s3126_s4 + $0xd8] sm:$0xf]  ;;  %150 = vst [vmem:[#allocation3 + $0xcc] sm:$0xf] %v149_v46 }
  0x1f   :  { %152 = vst [vmem:[#allocation3 + $0xd0] sm:$0xf] %v151_v47  ;;  %154 = vst [vmem:[#allocation3 + $0xd4] sm:$0xf] %v153_v48  ;;  %v155_v49 = vld [vmem:[%s3126_s4 + $0xcc] sm:$0xf] }
  0x20   :  { %v161_v51 = vld [vmem:[%s3126_s4 + $0xf0] sm:$0xf]  ;;  %156 = vst [vmem:[#allocation3 + $0xd8] sm:$0xf] %v155_v49  ;;  %158 = vst [vmem:[#allocation3 + $0xdc] sm:$0xff] %v157_v50  }
  0x21   :  { %162 = vst [vmem:[#allocation3 + $0xe4] sm:$0xf] %v161_v51  ;;  %v163_v52 = vld [vmem:[%s3126_s4 + $0xe4] sm:$0xf]  ;;  %v165_v53 = vld [vmem:[%s3126_s4 + $0xf4] sm:$0xf] }
  0x22   :  { %v167_v54 = vld [vmem:[%s3126_s4 + $0xe8] sm:$0xf]  ;;  %164 = vst [vmem:[#allocation3 + $0xe8] sm:$0xf] %v163_v52  ;;  %166 = vst [vmem:[#allocation3 + $0xec] sm:$0xf] %v165_v53 }
  0x23   :  { %168 = vst [vmem:[#allocation3 + $0xf0] sm:$0xf] %v167_v54  ;;  %v169_v55 = vld [vmem:[%s3126_s4 + $0xf8] sm:$0xf]  ;;  %v171_v56 = vld [vmem:[%s3126_s4 + $0xec] sm:$0xf] }
  0x24   :  { %v173_v57 = vld [vmem:[%s3126_s4 + $0xfc] sm:$0xf]  ;;  %170 = vst [vmem:[#allocation3 + $0xf4] sm:$0xf] %v169_v55  ;;  %172 = vst [vmem:[#allocation3 + $0xf8] sm:$0xf] %v171_v56 }
  0x25   :  { %174 = vst [vmem:[#allocation3 + $0xfc] sm:$0xf] %v173_v57 }
  0x26   :  { %333 = vsyncadd [#allocation4], 4096  ;;  %v350_v58 = vld [vmem:[%s3119_s1] sm:$0xff]  ;;  %v351_v59 = vld [vmem:[%s3119_s1 + $0x8] sm:$0xff]  ;;  %v3127_v60 = vmov 0.0|0.0   ;;  %vm377_vm0 = vcmask 261120  }
  0x27   :  { %1988 = vmatprep.subr.bf16.mxu0 %v3127_v60  ;;  %v1989_v61 = vpack.c.bf16 %v351_v59, %v350_v58  ;;  %v352_v62 = vld [vmem:[%s3119_s1 + $0x10] sm:$0xff]  ;;  %v353_v63 = vld [vmem:[%s3119_s1 + $0x18] sm:$0xff]  ;;  %v354_v1 = vld [vmem:[%s3119_s1 + $0x20] sm:$0xff]  ;;  %vm614_vm1 = vcmask 1043456   ;;  %v3129_v49 = vmov 0   ;;  %vm601_vm2 = vcmask 326656  }
  0x28   :  { %v1992_v0 = vpack.c.bf16 %v353_v63, %v352_v62  ;;  %v355_v2 = vld [vmem:[%s3119_s1 + $0x28] sm:$0xff]  ;;  %v356_v5 = vld [vmem:[%s3119_s1 + $0x30] sm:$0xff]  ;;  %v357_v6 = vld [vmem:[%s3119_s1 + $0x38] sm:$0xff]  ;;  %659 = vmatprep.mubr.bf16.mxu1 %v3129_v49 }
  0x29   :  { %1990 = vmatpush1.bf16.msra.mxu0 %v1989_v61  ;;  %v1995_v3 = vpack.c.bf16 %v355_v2, %v354_v1  ;;  %v335_v4 = vld [vmem:[%s3118_s0 + $0x8] sm:$0xff]  ;;  %v1998_v7 = vpack.c.bf16 %v357_v6, %v356_v5  ;;  %v358_v8 = vld [vmem:[%s3119_s1 + $0x40] sm:$0xff]  ;;  %v360_v13 = vld [vmem:[%s3119_s1 + $0x50] sm:$0xff] }
  0x2a   :  { %1991 = vmatprep.subr.bf16.mxu0 %v3127_v60  ;;  %1880 = vmatprep.mubr.msk.f32.mxu0 %vm377_vm0, %v335_v4  ;;  %v359_v9 = vld [vmem:[%s3119_s1 + $0x48] sm:$0xff]  ;;  %v2046_v10 = vld [vmem:[%s3121_s3 + $0x4] ss:$16 sps:$4 sm:$0xff]   ;;  %v2048_v11 = vld [vmem:[%s3121_s3] ss:$16 sps:$4 sm:$0xff]  }
  0x2b   :  { %v2001_v12 = vpack.c.bf16 %v359_v9, %v358_v8  ;;  %627 = vmatprep.subr.bf16.mxu1 %v2046_v10  ;;  %v361_v14 = vld [vmem:[%s3119_s1 + $0x58] sm:$0xff]  ;;  %v362_v16 = vld [vmem:[%s3119_s1 + $0x60] sm:$0xff]  ;;  %v363_v17 = vld [vmem:[%s3119_s1 + $0x68] sm:$0xff] }
  0x2c   :  { %628 = vmatpush1.bf16.msra.mxu1 %v2048_v11  ;;  %v2004_v15 = vpack.c.bf16 %v361_v14, %v360_v13  ;;  %v2007_v18 = vpack.c.bf16 %v363_v17, %v362_v16  ;;  %v364_v19 = vld [vmem:[%s3119_s1 + $0x70] sm:$0xff]  ;;  %v365_v20 = vld [vmem:[%s3119_s1 + $0x78] sm:$0xff]  ;;  %v366_v22 = vld [vmem:[%s3119_s1 + $0x80] sm:$0xff] }
  0x2d   :  { %1993 = vmatpush1.bf16.msra.mxu0 %v1992_v0  ;;  %v2010_v21 = vpack.c.bf16 %v365_v20, %v364_v19  ;;  %v367_v23 = vld [vmem:[%s3119_s1 + $0x88] sm:$0xff]  ;;  %v368_v25 = vld [vmem:[%s3119_s1 + $0x90] sm:$0xff]  ;;  %v369_v26 = vld [vmem:[%s3119_s1 + $0x98] sm:$0xff] }
  0x2e   :  { %1994 = vmatprep.subr.bf16.mxu0 %v3127_v60  ;;  %v2013_v24 = vpack.c.bf16 %v367_v23, %v366_v22  ;;  %v2016_v27 = vpack.c.bf16 %v369_v26, %v368_v25  ;;  %v334_v28 = vld [vmem:[%s3118_s0] sm:$0xff]  ;;  %v337_v29 = vld [vmem:[%s3118_s0 + $0x18] sm:$0xff]  ;;  %v336_v30 = vld [vmem:[%s3118_s0 + $0x10] sm:$0xff] }
  0x2f   :  { %v339_v31 = vld [vmem:[%s3118_s0 + $0x28] sm:$0xff]  ;;  %v338_v32 = vld [vmem:[%s3118_s0 + $0x20] sm:$0xff]  ;;  %v341_v33 = vld [vmem:[%s3118_s0 + $0x38] sm:$0xff] }
  0x30   :  { %v340_v34 = vld [vmem:[%s3118_s0 + $0x30] sm:$0xff]  ;;  %v343_v35 = vld [vmem:[%s3118_s0 + $0x48] sm:$0xff]  ;;  %v342_v36 = vld [vmem:[%s3118_s0 + $0x40] sm:$0xff] }
  0x31   :  { %1996 = vmatpush1.bf16.msra.mxu0 %v1995_v3  ;;  %v345_v37 = vld [vmem:[%s3118_s0 + $0x58] sm:$0xff]  ;;  %v344_v38 = vld [vmem:[%s3118_s0 + $0x50] sm:$0xff]  ;;  %v347_v39 = vld [vmem:[%s3118_s0 + $0x68] sm:$0xff] }
  0x32   :  { %1997 = vmatprep.subr.bf16.mxu0 %v3127_v60  ;;  %v346_v40 = vld [vmem:[%s3118_s0 + $0x60] sm:$0xff]  ;;  %v349_v41 = vld [vmem:[%s3118_s0 + $0x78] sm:$0xff]  ;;  %v348_v42 = vld [vmem:[%s3118_s0 + $0x70] sm:$0xff] }
  0x33   :  { %v2049_v43 = vld [vmem:[%s3121_s3 + $0x24] ss:$16 sps:$4 sm:$0xff]   ;;  %v2051_v44 = vld [vmem:[%s3121_s3 + $0x20] ss:$16 sps:$4 sm:$0xff]   ;;  %v2056_v50 = vld [vmem:[%s3121_s3 + $0xc] ss:$16 sps:$4 sm:$0xff]  }
  0x34   :  { %629 = vmatprep.subr.bf16.mxu1 %v2049_v43  ;;  %v527_v45 = vld [vmem:[%s3121_s3 + $0x40] sm:$0xff]  ;;  %v2054_v62 = vld [vmem:[%s3121_s3 + $0x8] ss:$16 sps:$4 sm:$0xff]   ;;  %v2059_v1 = vld [vmem:[%s3121_s3 + $0x2c] ss:$16 sps:$4 sm:$0xff]  }
  0x35   :  { %1999 = vmatpush1.bf16.msra.mxu0 %v1998_v7  ;;  %630 = vmatpush1.bf16.msra.mxu1 %v2051_v44  ;;  %v1897_v46 = vcombine.high %v527_v45, %v527_v45  ;;  %v1896_v47 = vcombine.low %v527_v45, %v527_v45  ;;  %v1879_v51 = vld [vmem:[%s3120_s2] ss:$0 sm:$0xff]  ;;  %v528_v2 = vld [vmem:[%s3121_s3 + $0x48] sm:$0xff] }
  0x36   :  { %2000 = vmatprep.subr.bf16.mxu0 %v3127_v60  ;;  %v2057_v5 = vld [vmem:[%s3121_s3 + $0x28] ss:$16 sps:$4 sm:$0xff]   ;;  %v1899_v8 = vcombine.high %v528_v2, %v528_v2  ;;  %v1898_v9 = vcombine.low %v528_v2, %v528_v2 }
  0x37   :  { %1900 = vmatprep.subr.msk.bf16.mxu1 %vm614_vm1, %v1897_v46  ;;  %v616_v48 = vsel %vm614_vm1, %v1896_v47, 0 }
  0x39   :  { %2002 = vmatpush1.bf16.msra.mxu0 %v2001_v12  ;;  %632 = vmatpush1.bf16.msra.mxu1 %v616_v48 }
  0x3a   :  { %2003 = vmatprep.subr.bf16.mxu0 %v3127_v60  ;;  %700 = vmatprep.subr.bf16.mxu1 %v2056_v50 }
  0x3d   :  { %2005 = vmatpush1.bf16.msra.mxu0 %v2004_v15  ;;  %v622_v15 = vsel %vm614_vm1, %v1898_v9, 0 }
  0x3e   :  { %2006 = vmatprep.subr.bf16.mxu0 %v3127_v60 }
  0x41   :  { %2008 = vmatpush1.bf16.msra.mxu0 %v2007_v18 }
  0x42   :  { %2009 = vmatprep.subr.bf16.mxu0 %v3127_v60 }
  0x45   :  { %2011 = vmatpush1.bf16.msra.mxu0 %v2010_v21 }
  0x46   :  { %2012 = vmatprep.subr.bf16.mxu0 %v3127_v60 }
  0x49   :  { %2014 = vmatpush1.bf16.msra.mxu0 %v2013_v24 }
  0x4a   :  { %2015 = vmatprep.subr.bf16.mxu0 %v3127_v60 }
  0x4d   :  { %2017 = vmatpush1.bf16.msra.mxu0 %v2016_v27 }
  0x50   :  { %467 = vmatmul.mubr.f32.vlgmr.msra.gmra.mrb[0].mxu0 %v334_v28 }
  0x51   :  { %1881 = vmatprep.mubr.msk.f32.mxu0 %vm377_vm0, %v337_v29 }
  0x54   :  { %472 = vmatmul.mubr.f32.gmra.mrb[2].mxu0 %v336_v30 }
  0x55   :  { %1882 = vmatprep.mubr.msk.f32.mxu0 %vm377_vm0, %v339_v31 }
  0x58   :  { %477 = vmatmul.mubr.f32.gmra.mrb[4].mxu0 %v338_v32  ;;  %v531_v32 = vlaneseq }
  0x59   :  { %1883 = vmatprep.mubr.msk.f32.mxu0 %vm377_vm0, %v341_v33 }
  0x5a   :  { %v532_v33 = vshrl.u32 %v531_v32, 7 }
  0x5c   :  { %482 = vmatmul.mubr.f32.gmra.mrb[6].mxu0 %v340_v34  ;;  %v533_v34 = vsub.s32 0, %v532_v33 }
  0x5d   :  { %1884 = vmatprep.mubr.msk.f32.mxu0 %vm377_vm0, %v343_v35  ;;  %v529_v35 = vld [vmem:[%s3122_s5] sm:$0xf] }
  0x60   :  { %487 = vmatmul.mubr.f32.gmra.mrb[8].mxu0 %v342_v36  ;;  %v537_v36 = vsub.s32 1, %v532_v33 }
  0x61   :  { %1885 = vmatprep.mubr.msk.f32.mxu0 %vm377_vm0, %v345_v37  ;;  %v534_v37 = vrot.slane %v529_v35, %v533_v34 }
  0x64   :  { %492 = vmatmul.mubr.f32.gmra.mrb[10].mxu0 %v344_v38  ;;  %v538_v38 = vrot.slane %v529_v35, %v537_v36 }
  0x65   :  { %1886 = vmatprep.mubr.msk.f32.mxu0 %vm377_vm0, %v347_v39 }
  0x68   :  { %497 = vmatmul.mubr.f32.gmra.mrb[12].mxu0 %v346_v40 }
  0x69   :  { %1887 = vmatprep.mubr.msk.f32.mxu0 %vm377_vm0, %v349_v41 }
  0x6c   :  { %502 = vmatmul.mubr.f32.gmra.mrb[14].mxu0 %v348_v42 }
 0x123   :  { %v468_v52 = vpop.f32.mrb[0].mxu0 }
 0x124   :  { %v470_v53 = vpop.f32.mrb[1].mxu0  ;;  %v469_v54 = vadd.f32 %v1879_v51, %v468_v52 }
 0x126   :  { %v507_v58 = vmax.f32 %v469_v54, 0.0 }
 0x127   :  { %v473_v55 = vpop.f32.mrb[2].mxu0 }
 0x128   :  { %v474_v56 = vadd.f32 %v1879_v51, %v473_v55  ;;  %v475_v57 = vpop.f32.mrb[3].mxu0 }
 0x12a   :  { %v508_v59 = vmax.f32 %v474_v56, 0.0 }
 0x12b   :  { %v478_v61 = vpop.f32.mrb[4].mxu0 }
 0x12c   :  { %v515_v63 = vpack.c.bf16 %v508_v59, %v507_v58  ;;  %v480_v0 = vpop.f32.mrb[5].mxu0  ;;  %v479_v3 = vadd.f32 %v1879_v51, %v478_v61 }
 0x12e   :  { %1901 = vmatmul.mubr.msk.bf16.vlgmr.msra.gmra.mrb[0].mxu1 %vm601_vm2, %v515_v63  ;;  %v509_v10 = vmax.f32 %v479_v3, 0.0 }
 0x12f   :  { %701 = vmatpush1.bf16.msra.mxu1 %v2054_v62  ;;  %v483_v4 = vpop.f32.mrb[6].mxu0  ;;  %669 = vmatprep.mubr.bf16.mxu1 %v3129_v49 }
 0x130   :  { %v484_v6 = vadd.f32 %v1879_v51, %v483_v4  ;;  %v485_v7 = vpop.f32.mrb[7].mxu0  ;;  %702 = vmatprep.subr.bf16.mxu1 %v2059_v1  ;;  %v541_v4 = vsub.s32 2, %v532_v33 }
 0x131   :  { %v545_v7 = vsub.s32 3, %v532_v33 }
 0x132   :  { %v510_v11 = vmax.f32 %v484_v6, 0.0 }
 0x133   :  { %v488_v12 = vpop.f32.mrb[8].mxu0  ;;  %703 = vmatpush1.bf16.msra.mxu1 %v2057_v5 }
 0x134   :  { %v516_v13 = vpack.c.bf16 %v510_v11, %v509_v10  ;;  %v490_v14 = vpop.f32.mrb[9].mxu0  ;;  %1905 = vmatprep.subr.msk.bf16.mxu1 %vm614_vm1, %v1899_v8  ;;  %v489_v16 = vadd.f32 %v1879_v51, %v488_v12  ;;  %v542_v11 = vrot.slane %v529_v35, %v541_v4  ;;  %v546_v12 = vrot.slane %v529_v35, %v545_v7 }
 0x136   :  { %1902 = vmatmul.mubr.msk.bf16.gmra.mrb[4].mxu1 %vm601_vm2, %v516_v13  ;;  %v511_v20 = vmax.f32 %v489_v16, 0.0 }
 0x137   :  { %v493_v17 = vpop.f32.mrb[10].mxu0  ;;  %679 = vmatprep.mubr.bf16.mxu1 %v3129_v49  ;;  %705 = vmatpush1.bf16.msra.mxu1 %v622_v15 }
 0x138   :  { %v494_v18 = vadd.f32 %v1879_v51, %v493_v17  ;;  %v495_v19 = vpop.f32.mrb[11].mxu0 }
 0x13a   :  { %v512_v21 = vmax.f32 %v494_v18, 0.0 }
 0x13b   :  { %v498_v22 = vpop.f32.mrb[12].mxu0 }
 0x13c   :  { %v517_v23 = vpack.c.bf16 %v512_v21, %v511_v20  ;;  %v500_v24 = vpop.f32.mrb[13].mxu0  ;;  %v499_v25 = vadd.f32 %v1879_v51, %v498_v22 }
 0x13e   :  { %1903 = vmatmul.mubr.msk.bf16.gmra.mrb[8].mxu1 %vm601_vm2, %v517_v23  ;;  %v513_v29 = vmax.f32 %v499_v25, 0.0 }
 0x13f   :  { %v503_v26 = vpop.f32.mrb[14].mxu0  ;;  %689 = vmatprep.mubr.bf16.mxu1 %v3129_v49 }
 0x140   :  { %v504_v27 = vadd.f32 %v1879_v51, %v503_v26  ;;  %v505_v28 = vpop.f32.mrb[15].mxu0 }
 0x142   :  { %v514_v30 = vmax.f32 %v504_v27, 0.0 }
 0x144   :  { %v518_v31 = vpack.c.bf16 %v514_v30, %v513_v29 }
 0x146   :  { %1904 = vmatmul.mubr.msk.bf16.gmra.mrb[12].mxu1 %vm601_vm2, %v518_v31 }
 0x147   :  { %732 = vmatprep.mubr.bf16.mxu1 %v3129_v49 }
 0x14e   :  { %1906 = vmatmul.mubr.msk.bf16.vlgmr.msra.gmra.mrb[16].mxu1 %vm601_vm2, %v515_v63 }
 0x14f   :  { %742 = vmatprep.mubr.bf16.mxu1 %v3129_v49 }
 0x156   :  { %1907 = vmatmul.mubr.msk.bf16.gmra.mrb[20].mxu1 %vm601_vm2, %v516_v13 }
 0x157   :  { %752 = vmatprep.mubr.bf16.mxu1 %v3129_v49 }
 0x15e   :  { %1908 = vmatmul.mubr.msk.bf16.gmra.mrb[24].mxu1 %vm601_vm2, %v517_v23 }
 0x15f   :  { %762 = vmatprep.mubr.bf16.mxu1 %v3129_v49 }
 0x166   :  { %1909 = vmatmul.mubr.msk.bf16.gmra.mrb[28].mxu1 %vm601_vm2, %v518_v31 }
 0x201   :  { %v661_v39 = vpop.f32.mrb[0].mxu1 }
 0x202   :  { %v2601_v40 = vadd.f32 %v661_v39, %v534_v37  ;;  %v663_v41 = vpop.f32.mrb[1].mxu1 }
 0x203   :  { %v2603_v42 = vadd.f32 %v663_v41, %v538_v38  ;;  %v665_v43 = vpop.f32.mrb[2].mxu1 }
 0x204   :  { %v2605_v44 = vadd.f32 %v665_v43, %v534_v37  ;;  %v667_v45 = vpop.f32.mrb[3].mxu1 }
 0x205   :  { %v2607_v46 = vadd.f32 %v667_v45, %v538_v38 }
 0x209   :  { %v671_v47 = vpop.f32.mrb[4].mxu1 }
 0x20a   :  { %v2609_v48 = vadd.f32 %v671_v47, %v534_v37  ;;  %v673_v50 = vpop.f32.mrb[5].mxu1 }
 0x20b   :  { %v2611_v51 = vadd.f32 %v673_v50, %v538_v38  ;;  %v675_v52 = vpop.f32.mrb[6].mxu1 }
 0x20c   :  { %v2613_v53 = vadd.f32 %v675_v52, %v534_v37  ;;  %v677_v54 = vpop.f32.mrb[7].mxu1 }
 0x20d   :  { %v2615_v55 = vadd.f32 %v677_v54, %v538_v38 }
 0x211   :  { %v681_v56 = vpop.f32.mrb[8].mxu1 }
 0x212   :  { %v2617_v57 = vadd.f32 %v681_v56, %v534_v37  ;;  %v683_v58 = vpop.f32.mrb[9].mxu1 }
 0x213   :  { %v2619_v59 = vadd.f32 %v683_v58, %v538_v38  ;;  %v685_v61 = vpop.f32.mrb[10].mxu1 }
 0x214   :  { %3131 = vst [vmem:[#allocation8_spill] sm:$0xff] %v2617_v57  ;;  %v2621_v62 = vadd.f32 %v685_v61, %v534_v37  ;;  %v687_v63 = vpop.f32.mrb[11].mxu1 }
 0x215   :  { %3132 = vst [vmem:[#allocation9_spill] sm:$0xff] %v2619_v59  ;;  %v2623_v0 = vadd.f32 %v687_v63, %v538_v38 }
 0x216   :  { %3133 = vst [vmem:[#allocation10_spill] sm:$0xff] %v2621_v62 }
 0x217   :  { %3134 = vst [vmem:[#allocation11_spill] sm:$0xff] %v2623_v0 }
 0x219   :  { %v691_v1 = vpop.f32.mrb[12].mxu1 }
 0x21a   :  { %v2625_v2 = vadd.f32 %v691_v1, %v534_v37  ;;  %v693_v3 = vpop.f32.mrb[13].mxu1 }
 0x21b   :  { %v2627_v5 = vadd.f32 %v693_v3, %v538_v38  ;;  %v695_v6 = vpop.f32.mrb[14].mxu1 }
 0x21c   :  { %3135 = vst [vmem:[#allocation12_spill] sm:$0xff] %v2625_v2  ;;  %v2629_v8 = vadd.f32 %v695_v6, %v534_v37  ;;  %v697_v9 = vpop.f32.mrb[15].mxu1 }
 0x21d   :  { %3136 = vst [vmem:[#allocation13_spill] sm:$0xff] %v2627_v5  ;;  %v2631_v10 = vadd.f32 %v697_v9, %v538_v38 }
 0x21e   :  { %3137 = vst [vmem:[#allocation14_spill] sm:$0xff] %v2629_v8 }
 0x21f   :  { %3138 = vst [vmem:[#allocation15_spill] sm:$0xff] %v2631_v10 }
 0x221   :  { %v734_v13 = vpop.f32.mrb[16].mxu1 }
 0x222   :  { %v2633_v14 = vadd.f32 %v734_v13, %v542_v11  ;;  %v736_v15 = vpop.f32.mrb[17].mxu1 }
 0x223   :  { %v2635_v16 = vadd.f32 %v736_v15, %v546_v12  ;;  %v738_v17 = vpop.f32.mrb[18].mxu1 }
 0x224   :  { %v2637_v18 = vadd.f32 %v738_v17, %v542_v11  ;;  %v740_v19 = vpop.f32.mrb[19].mxu1 }
 0x225   :  { %v2639_v20 = vadd.f32 %v740_v19, %v546_v12 }
 0x229   :  { %v744_v21 = vpop.f32.mrb[20].mxu1 }
 0x22a   :  { %v2641_v22 = vadd.f32 %v744_v21, %v542_v11  ;;  %v746_v23 = vpop.f32.mrb[21].mxu1 }
 0x22b   :  { %v2643_v24 = vadd.f32 %v746_v23, %v546_v12  ;;  %v748_v25 = vpop.f32.mrb[22].mxu1 }
 0x22c   :  { %v2645_v26 = vadd.f32 %v748_v25, %v542_v11  ;;  %v750_v27 = vpop.f32.mrb[23].mxu1 }
 0x22d   :  { %v2647_v28 = vadd.f32 %v750_v27, %v546_v12 }
 0x22e   :  { %3139 = vst [vmem:[#allocation16_spill] sm:$0xff] %v2645_v26 }
 0x231   :  { %v754_v29 = vpop.f32.mrb[24].mxu1 }
 0x232   :  { %v2649_v30 = vadd.f32 %v754_v29, %v542_v11  ;;  %v756_v31 = vpop.f32.mrb[25].mxu1 }
 0x233   :  { %v2651_v32 = vadd.f32 %v756_v31, %v546_v12  ;;  %v758_v33 = vpop.f32.mrb[26].mxu1 }
 0x234   :  { %3140 = vst [vmem:[#allocation17_spill] sm:$0xff] %v2649_v30  ;;  %v2653_v34 = vadd.f32 %v758_v33, %v542_v11  ;;  %v760_v35 = vpop.f32.mrb[27].mxu1 }
 0x235   :  { %3141 = vst [vmem:[#allocation18_spill] sm:$0xff] %v2651_v32  ;;  %v2655_v36 = vadd.f32 %v760_v35, %v546_v12 }
 0x236   :  { %3142 = vst [vmem:[#allocation19_spill] sm:$0xff] %v2653_v34 }
 0x237   :  { %3143 = vst [vmem:[#allocation20_spill] sm:$0xff] %v2655_v36 }
 0x239   :  { %v764_v37 = vpop.f32.mrb[28].mxu1 }
 0x23a   :  { %v2657_v38 = vadd.f32 %v764_v37, %v542_v11  ;;  %v766_v39 = vpop.f32.mrb[29].mxu1 }
 0x23b   :  { %v2659_v41 = vadd.f32 %v766_v39, %v546_v12  ;;  %v768_v43 = vpop.f32.mrb[30].mxu1 }
 0x23c   :  { %3144 = vst [vmem:[#allocation21_spill] sm:$0xff] %v2657_v38  ;;  %v2661_v45 = vadd.f32 %v768_v43, %v542_v11  ;;  %v770_v47 = vpop.f32.mrb[31].mxu1 }
 0x23d   :  { %3145 = vst [vmem:[#allocation22_spill] sm:$0xff] %v2659_v41  ;;  %v2663_v50 = vadd.f32 %v770_v47, %v546_v12 }
 0x23e   :  { %3146 = vst [vmem:[#allocation23_spill] sm:$0xff] %v2661_v45 }
 0x23f   :  { %3147 = vst [vmem:[#allocation24_spill] sm:$0xff] %v2663_v50 }
 0x240   :  { %2194 = dma.done.wait [#allocation4], 4096 }
 0x241   :  { %2195 = vsyncadd [#allocation4], 4294963200  ;;  %877 = vmatprep.mubr.bf16.mxu0 %v3129_v49  ;;  %918 = vmatprep.mubr.bf16.mxu1 %v3129_v49  ;;  %v2667_v52 = vld [vmem:[#allocation3 + $0x8] sm:$0xff]  ;;  %v2669_v54 = vld [vmem:[#allocation3] sm:$0xff]  ;;  %v3148_v45 = vmov 0   ;;  %vm2198_vm3 = vmmov 0  }
 0x242   :  { %v2671_v56 = vld [vmem:[#allocation3 + $0x28] sm:$0xff]  ;;  %845 = vmatprep.subr.bf16.mxu0 %v2667_v52  ;;  %v2675_v58 = vld [vmem:[#allocation3 + $0x18] sm:$0xff]  ;;  %v2678_v61 = vld [vmem:[#allocation3 + $0x20] sm:$0xff]  ;;  %vm1853_vm4 = vcmask 7168  }
 0x243   :  { %846 = vmatpush1.bf16.msra.mxu0 %v2669_v54  ;;  %886 = vmatprep.subr.bf16.mxu1 %v2675_v58  ;;  %v2681_v63 = vld [vmem:[#allocation3 + $0x10] sm:$0xff]  ;;  %v2683_v1 = vld [vmem:[#allocation3 + $0x38] sm:$0xff]  ;;  %v2685_v3 = vld [vmem:[#allocation3 + $0x48] sm:$0xff] }
 0x244   :  { %847 = vmatprep.subr.bf16.mxu0 %v2671_v56  ;;  %887 = vmatpush1.bf16.msra.mxu1 %v2681_v63  ;;  %v2689_v4 = vld [vmem:[#allocation3 + $0x30] sm:$0xff]  ;;  %v2692_v6 = vld [vmem:[#allocation3 + $0x58] sm:$0xff]  ;;  %v2695_v7 = vld [vmem:[#allocation3 + $0x40] sm:$0xff] }
 0x245   :  { %888 = vmatprep.subr.bf16.mxu1 %v2683_v1  ;;  %v2697_v9 = vld [vmem:[#allocation3 + $0x68] sm:$0xff]  ;;  %v2701_v11 = vld [vmem:[#allocation3 + $0x50] sm:$0xff]  ;;  %v2704_v12 = vld [vmem:[#allocation3 + $0x78] sm:$0xff] }
 0x246   :  { %v2707_v13 = vld [vmem:[#allocation3 + $0x60] sm:$0xff]  ;;  %v2709_v15 = vld [vmem:[#allocation3 + $0x88] sm:$0xff]  ;;  %v2713_v17 = vld [vmem:[#allocation3 + $0x70] sm:$0xff] }
 0x247   :  { %848 = vmatpush1.bf16.msra.mxu0 %v2678_v61  ;;  %v2716_v19 = vld [vmem:[#allocation3 + $0x98] sm:$0xff]  ;;  %v2719_v21 = vld [vmem:[#allocation3 + $0x80] sm:$0xff]  ;;  %v2721_v23 = vld [vmem:[#allocation3 + $0xa8] sm:$0xff] }
 0x248   :  { %849 = vmatprep.subr.bf16.mxu0 %v2685_v3  ;;  %889 = vmatpush1.bf16.msra.mxu1 %v2689_v4  ;;  %v2725_v25 = vld [vmem:[#allocation3 + $0x90] sm:$0xff]  ;;  %v2728_v27 = vld [vmem:[#allocation3 + $0xb8] sm:$0xff]  ;;  %v2731_v29 = vld [vmem:[#allocation3 + $0xa0] sm:$0xff] }
 0x249   :  { %890 = vmatprep.subr.bf16.mxu1 %v2692_v6  ;;  %v2733_v31 = vld [vmem:[#allocation3 + $0xc8] sm:$0xff]  ;;  %v2737_v33 = vld [vmem:[#allocation3 + $0xb0] sm:$0xff]  ;;  %v2740_v35 = vld [vmem:[#allocation3 + $0xd8] sm:$0xff] }
 0x24a   :  { %v2743_v37 = vld [vmem:[#allocation3 + $0xc0] sm:$0xff]  ;;  %v2745_v39 = vld [vmem:[#allocation3 + $0xe8] sm:$0xff]  ;;  %v2749_v43 = vld [vmem:[#allocation3 + $0xd0] sm:$0xff] }
 0x24b   :  { %850 = vmatpush1.bf16.msra.mxu0 %v2695_v7  ;;  %v2752_v47 = vld [vmem:[#allocation3 + $0xf8] sm:$0xff]  ;;  %v2755_v60 = vld [vmem:[#allocation3 + $0xe0] sm:$0xff]  ;;  %v2759_v49 = vld [vmem:[#allocation3 + $0xf0] sm:$0xff] }
 0x24c   :  { %851 = vmatprep.subr.bf16.mxu0 %v2697_v9  ;;  %891 = vmatpush1.bf16.msra.mxu1 %v2701_v11 }
 0x24d   :  { %892 = vmatprep.subr.bf16.mxu1 %v2704_v12 }
 0x24f   :  { %852 = vmatpush1.bf16.msra.mxu0 %v2707_v13 }
 0x250   :  { %853 = vmatprep.subr.bf16.mxu0 %v2709_v15  ;;  %893 = vmatpush1.bf16.msra.mxu1 %v2713_v17 }
 0x251   :  { %894 = vmatprep.subr.bf16.mxu1 %v2716_v19 }
 0x253   :  { %854 = vmatpush1.bf16.msra.mxu0 %v2719_v21 }
 0x254   :  { %855 = vmatprep.subr.bf16.mxu0 %v2721_v23  ;;  %895 = vmatpush1.bf16.msra.mxu1 %v2725_v25 }
 0x255   :  { %896 = vmatprep.subr.bf16.mxu1 %v2728_v27 }
 0x257   :  { %856 = vmatpush1.bf16.msra.mxu0 %v2731_v29 }
 0x258   :  { %857 = vmatprep.subr.bf16.mxu0 %v2733_v31  ;;  %897 = vmatpush1.bf16.msra.mxu1 %v2737_v33 }
 0x259   :  { %898 = vmatprep.subr.bf16.mxu1 %v2740_v35 }
 0x25b   :  { %858 = vmatpush1.bf16.msra.mxu0 %v2743_v37 }
 0x25c   :  { %859 = vmatprep.subr.bf16.mxu0 %v2745_v39  ;;  %899 = vmatpush1.bf16.msra.mxu1 %v2749_v43 }
 0x25d   :  { %900 = vmatprep.subr.bf16.mxu1 %v2752_v47 }
 0x25f   :  { %860 = vmatpush1.bf16.msra.mxu0 %v2755_v60 }
 0x260   :  { %960 = vmatprep.subr.bf16.mxu0 %v2667_v52  ;;  %901 = vmatpush1.bf16.msra.mxu1 %v2759_v49 }
 0x261   :  { %1001 = vmatprep.subr.bf16.mxu1 %v2675_v58 }
 0x262   :  { %878 = vmatmul.mubr.bf16.vlgmr.msra.gmra.mrb[16].mxu0 %v3148_v45 }
 0x263   :  { %961 = vmatpush1.bf16.msra.mxu0 %v2669_v54  ;;  %992 = vmatprep.mubr.bf16.mxu0 %v3148_v45 }
 0x264   :  { %919 = vmatmul.mubr.bf16.vlgmr.msra.gmra.mrb[32].mxu1 %v3148_v45  ;;  %962 = vmatprep.subr.bf16.mxu0 %v2671_v56 }
 0x265   :  { %1002 = vmatpush1.bf16.msra.mxu1 %v2681_v63  ;;  %1033 = vmatprep.mubr.bf16.mxu1 %v3148_v45 }
 0x266   :  { %1003 = vmatprep.subr.bf16.mxu1 %v2683_v1 }
 0x267   :  { %963 = vmatpush1.bf16.msra.mxu0 %v2678_v61 }
 0x268   :  { %964 = vmatprep.subr.bf16.mxu0 %v2685_v3 }
 0x269   :  { %1004 = vmatpush1.bf16.msra.mxu1 %v2689_v4 }
 0x26a   :  { %1005 = vmatprep.subr.bf16.mxu1 %v2692_v6 }
 0x26b   :  { %965 = vmatpush1.bf16.msra.mxu0 %v2695_v7 }
 0x26c   :  { %966 = vmatprep.subr.bf16.mxu0 %v2697_v9 }
 0x26d   :  { %1006 = vmatpush1.bf16.msra.mxu1 %v2701_v11 }
 0x26e   :  { %1007 = vmatprep.subr.bf16.mxu1 %v2704_v12 }
 0x26f   :  { %967 = vmatpush1.bf16.msra.mxu0 %v2707_v13 }
 0x270   :  { %968 = vmatprep.subr.bf16.mxu0 %v2709_v15 }
 0x271   :  { %1008 = vmatpush1.bf16.msra.mxu1 %v2713_v17 }
 0x272   :  { %1009 = vmatprep.subr.bf16.mxu1 %v2716_v19 }
 0x273   :  { %969 = vmatpush1.bf16.msra.mxu0 %v2719_v21 }
 0x274   :  { %970 = vmatprep.subr.bf16.mxu0 %v2721_v23 }
 0x275   :  { %1010 = vmatpush1.bf16.msra.mxu1 %v2725_v25 }
 0x276   :  { %1011 = vmatprep.subr.bf16.mxu1 %v2728_v27 }
 0x277   :  { %971 = vmatpush1.bf16.msra.mxu0 %v2731_v29 }
 0x278   :  { %972 = vmatprep.subr.bf16.mxu0 %v2733_v31 }
 0x279   :  { %1012 = vmatpush1.bf16.msra.mxu1 %v2737_v33 }
 0x27a   :  { %1013 = vmatprep.subr.bf16.mxu1 %v2740_v35 }
 0x27b   :  { %973 = vmatpush1.bf16.msra.mxu0 %v2743_v37 }
 0x27c   :  { %974 = vmatprep.subr.bf16.mxu0 %v2745_v39 }
 0x27d   :  { %1014 = vmatpush1.bf16.msra.mxu1 %v2749_v43 }
 0x27e   :  { %1015 = vmatprep.subr.bf16.mxu1 %v2752_v47 }
 0x27f   :  { %975 = vmatpush1.bf16.msra.mxu0 %v2755_v60 }
 0x280   :  { %1075 = vmatprep.subr.bf16.mxu0 %v2667_v52 }
 0x281   :  { %1016 = vmatpush1.bf16.msra.mxu1 %v2759_v49 }
 0x282   :  { %1116 = vmatprep.subr.bf16.mxu1 %v2675_v58 }
 0x335   :  { %v879_v50 = vpop.f32.mrb[16].mxu0 }
 0x336   :  { %v927_v10 = vadd.f32 %v879_v50, %v2601_v40  ;;  %v881_v8 = vpop.f32.mrb[17].mxu0 }
 0x337   :  { %v928_v38 = vadd.f32 %v881_v8, %v2603_v42  ;;  %v883_v41 = vpop.f32.mrb[18].mxu0  ;;  %v920_v5 = vpop.f32.mrb[32].mxu1 }
 0x338   :  { %v1910_v2 = vmul.f32 -1.442695, %v927_v10  ;;  %v884_v34 = vpop.f32.mrb[19].mxu0  ;;  %v922_v36 = vpop.f32.mrb[33].mxu1  ;;  %v929_v57 = vadd.f32 %v920_v5, %v2633_v14 }
 0x339   :  { %v1911_v0 = vmul.f32 -1.442695, %v928_v38  ;;  %v924_v62 = vpop.f32.mrb[34].mxu1  ;;  %v930_v32 = vadd.f32 %v922_v36, %v2635_v16 }
 0x33a   :  { %2062 = vpow2.f32 %v1910_v2  ;;  %v925_v30 = vpop.f32.mrb[35].mxu1 }
 0x33b   :  { %2064 = vpow2.f32 %v1911_v0  ;;  %v1912_v59 = vmul.f32 -1.442695, %v930_v32 }
 0x33d   :  { %2066 = vpow2.f32 %v1912_v59 }
 0x33e   :  { %2068 = vtanh.f32 %v929_v57 }
 0x344   :  { %v2063_v26 = vpop.eup %2062 }
 0x345   :  { %v2065_v40 = vpop.eup %2064  ;;  %v934_v50 = vadd.f32 1.0, %v2063_v26 }
 0x346   :  { %v940_v42 = vadd.f32 1.0, %v2065_v40 }
 0x347   :  { %2070 = vrcp.f32 %v934_v50  ;;  %v2067_v8 = vpop.eup %2066 }
 0x348   :  { %2072 = vrcp.f32 %v940_v42  ;;  %v2069_v10 = vpop.eup %2068  ;;  %v947_v62 = vadd.f32 1.0, %v2067_v8 }
 0x34a   :  { %2074 = vrcp.f32 %v947_v62 }
 0x351   :  { %v2071_v34 = vpop.eup %2070 }
 0x352   :  { %v2073_v2 = vpop.eup %2072  ;;  %v951_v30 = vmul.f32 %v2071_v34, %v2069_v10 }
 0x353   :  { %v950_v0 = vmul.f32 0.0, %v2073_v2 }
 0x354   :  { %v2075_v5 = vpop.eup %2074 }
 0x355   :  { %v2805_v38 = vadd.f32 %v951_v30, %v950_v0 }
 0x357   :  { %2076 = vtanh.f32 %v2805_v38 }
 0x361   :  { %v2077_v59 = vpop.eup %2076 }
 0x362   :  { %v954_v14 = vmul.f32 %v2077_v59, %v2075_v5 }
 0x364   :  { %v959_v16 = vpack.c.bf16 %v954_v14, %v954_v14 }
 0x366   :  { %993 = vmatmul.mubr.bf16.vlgmr.msra.gmra.mrb[20].mxu0 %v959_v16  ;;  %1034 = vmatmul.mubr.bf16.vlgmr.msra.gmra.mrb[36].mxu1 %v959_v16 }
 0x367   :  { %1076 = vmatpush1.bf16.msra.mxu0 %v2669_v54  ;;  %1117 = vmatpush1.bf16.msra.mxu1 %v2681_v63 }
 0x368   :  { %1077 = vmatprep.subr.bf16.mxu0 %v2671_v56  ;;  %1118 = vmatprep.subr.bf16.mxu1 %v2683_v1 }
 0x369   :  { %1107 = vmatprep.mubr.bf16.mxu0 %v3148_v45  ;;  %1148 = vmatprep.mubr.bf16.mxu1 %v3148_v45 }
 0x36b   :  { %1078 = vmatpush1.bf16.msra.mxu0 %v2678_v61  ;;  %1119 = vmatpush1.bf16.msra.mxu1 %v2689_v4 }
 0x36c   :  { %1079 = vmatprep.subr.bf16.mxu0 %v2685_v3  ;;  %1120 = vmatprep.subr.bf16.mxu1 %v2692_v6 }
 0x36f   :  { %1080 = vmatpush1.bf16.msra.mxu0 %v2695_v7  ;;  %1121 = vmatpush1.bf16.msra.mxu1 %v2701_v11 }
 0x370   :  { %1081 = vmatprep.subr.bf16.mxu0 %v2697_v9  ;;  %1122 = vmatprep.subr.bf16.mxu1 %v2704_v12 }
 0x373   :  { %1082 = vmatpush1.bf16.msra.mxu0 %v2707_v13  ;;  %1123 = vmatpush1.bf16.msra.mxu1 %v2713_v17 }
 0x374   :  { %1083 = vmatprep.subr.bf16.mxu0 %v2709_v15  ;;  %1124 = vmatprep.subr.bf16.mxu1 %v2716_v19 }
 0x377   :  { %1084 = vmatpush1.bf16.msra.mxu0 %v2719_v21  ;;  %1125 = vmatpush1.bf16.msra.mxu1 %v2725_v25 }
 0x378   :  { %1085 = vmatprep.subr.bf16.mxu0 %v2721_v23  ;;  %1126 = vmatprep.subr.bf16.mxu1 %v2728_v27 }
 0x37b   :  { %1086 = vmatpush1.bf16.msra.mxu0 %v2731_v29  ;;  %1127 = vmatpush1.bf16.msra.mxu1 %v2737_v33 }
 0x37c   :  { %1087 = vmatprep.subr.bf16.mxu0 %v2733_v31  ;;  %1128 = vmatprep.subr.bf16.mxu1 %v2740_v35 }
 0x37f   :  { %1088 = vmatpush1.bf16.msra.mxu0 %v2743_v37  ;;  %1129 = vmatpush1.bf16.msra.mxu1 %v2749_v43 }
 0x380   :  { %1089 = vmatprep.subr.bf16.mxu0 %v2745_v39  ;;  %1130 = vmatprep.subr.bf16.mxu1 %v2752_v47 }
 0x383   :  { %1090 = vmatpush1.bf16.msra.mxu0 %v2755_v60  ;;  %1131 = vmatpush1.bf16.msra.mxu1 %v2759_v49 }
 0x384   :  { %1190 = vmatprep.subr.bf16.mxu0 %v2667_v52  ;;  %1231 = vmatprep.subr.bf16.mxu1 %v2675_v58 }
 0x439   :  { %v994_v57 = vpop.f32.mrb[20].mxu0  ;;  %v1035_v26 = vpop.f32.mrb[36].mxu1 }
 0x43a   :  { %v1042_v32 = vadd.f32 %v994_v57, %v2605_v44  ;;  %v996_v36 = vpop.f32.mrb[21].mxu0  ;;  %v1037_v41 = vpop.f32.mrb[37].mxu1  ;;  %v1044_v0 = vadd.f32 %v1035_v26, %v2637_v18 }
 0x43b   :  { %v1043_v40 = vadd.f32 %v996_v36, %v2607_v46  ;;  %v998_v50 = vpop.f32.mrb[22].mxu0  ;;  %v1039_v42 = vpop.f32.mrb[38].mxu1  ;;  %v1045_v2 = vadd.f32 %v1037_v41, %v2639_v20 }
 0x43c   :  { %v1913_v8 = vmul.f32 -1.442695, %v1042_v32  ;;  %v999_v10 = vpop.f32.mrb[23].mxu0  ;;  %v1040_v34 = vpop.f32.mrb[39].mxu1 }
 0x43d   :  { %v1914_v62 = vmul.f32 -1.442695, %v1043_v40  ;;  %v1915_v30 = vmul.f32 -1.442695, %v1045_v2 }
 0x43e   :  { %2078 = vpow2.f32 %v1913_v8 }
 0x43f   :  { %2080 = vpow2.f32 %v1914_v62 }
 0x440   :  { %2082 = vpow2.f32 %v1915_v30 }
 0x441   :  { %2084 = vtanh.f32 %v1044_v0 }
 0x448   :  { %v2079_v5 = vpop.eup %2078 }
 0x449   :  { %v2081_v59 = vpop.eup %2080  ;;  %v1049_v44 = vadd.f32 1.0, %v2079_v5 }
 0x44a   :  { %v1055_v14 = vadd.f32 1.0, %v2081_v59  ;;  %v2083_v46 = vpop.eup %2082 }
 0x44b   :  { %2086 = vrcp.f32 %v1049_v44  ;;  %v2085_v16 = vpop.eup %2084  ;;  %v1062_v40 = vadd.f32 1.0, %v2083_v46 }
 0x44c   :  { %2088 = vrcp.f32 %v1055_v14 }
 0x44d   :  { %2090 = vrcp.f32 %v1062_v40 }
 0x455   :  { %v2087_v57 = vpop.eup %2086 }
 0x456   :  { %v2089_v32 = vpop.eup %2088  ;;  %v1066_v36 = vmul.f32 %v2087_v57, %v2085_v16 }
 0x457   :  { %v1065_v50 = vmul.f32 %v2089_v32, %v2805_v38  ;;  %v2091_v18 = vpop.eup %2090 }
 0x459   :  { %v2847_v20 = vadd.f32 %v1066_v36, %v1065_v50 }
 0x45b   :  { %2092 = vtanh.f32 %v2847_v20 }
 0x465   :  { %v2093_v26 = vpop.eup %2092 }
 0x466   :  { %v1069_v41 = vmul.f32 %v2093_v26, %v2091_v18 }
 0x468   :  { %v1074_v42 = vpack.c.bf16 %v1069_v41, %v1069_v41 }
 0x46a   :  { %1108 = vmatmul.mubr.bf16.vlgmr.msra.gmra.mrb[24].mxu0 %v1074_v42  ;;  %1149 = vmatmul.mubr.bf16.vlgmr.msra.gmra.mrb[40].mxu1 %v1074_v42 }
 0x46b   :  { %1191 = vmatpush1.bf16.msra.mxu0 %v2669_v54  ;;  %1232 = vmatpush1.bf16.msra.mxu1 %v2681_v63 }
 0x46c   :  { %1192 = vmatprep.subr.bf16.mxu0 %v2671_v56  ;;  %1233 = vmatprep.subr.bf16.mxu1 %v2683_v1 }
 0x46d   :  { %1222 = vmatprep.mubr.bf16.mxu0 %v3148_v45  ;;  %1263 = vmatprep.mubr.bf16.mxu1 %v3148_v45 }
 0x46f   :  { %1193 = vmatpush1.bf16.msra.mxu0 %v2678_v61  ;;  %1234 = vmatpush1.bf16.msra.mxu1 %v2689_v4 }
 0x470   :  { %1194 = vmatprep.subr.bf16.mxu0 %v2685_v3  ;;  %1235 = vmatprep.subr.bf16.mxu1 %v2692_v6 }
 0x473   :  { %1195 = vmatpush1.bf16.msra.mxu0 %v2695_v7  ;;  %1236 = vmatpush1.bf16.msra.mxu1 %v2701_v11 }
 0x474   :  { %1196 = vmatprep.subr.bf16.mxu0 %v2697_v9  ;;  %1237 = vmatprep.subr.bf16.mxu1 %v2704_v12 }
 0x477   :  { %1197 = vmatpush1.bf16.msra.mxu0 %v2707_v13  ;;  %1238 = vmatpush1.bf16.msra.mxu1 %v2713_v17 }
 0x478   :  { %1198 = vmatprep.subr.bf16.mxu0 %v2709_v15  ;;  %1239 = vmatprep.subr.bf16.mxu1 %v2716_v19 }
 0x47b   :  { %1199 = vmatpush1.bf16.msra.mxu0 %v2719_v21  ;;  %1240 = vmatpush1.bf16.msra.mxu1 %v2725_v25 }
 0x47c   :  { %1200 = vmatprep.subr.bf16.mxu0 %v2721_v23  ;;  %1241 = vmatprep.subr.bf16.mxu1 %v2728_v27 }
 0x47f   :  { %1201 = vmatpush1.bf16.msra.mxu0 %v2731_v29  ;;  %1242 = vmatpush1.bf16.msra.mxu1 %v2737_v33 }
 0x480   :  { %1202 = vmatprep.subr.bf16.mxu0 %v2733_v31  ;;  %1243 = vmatprep.subr.bf16.mxu1 %v2740_v35 }
 0x483   :  { %1203 = vmatpush1.bf16.msra.mxu0 %v2743_v37  ;;  %1244 = vmatpush1.bf16.msra.mxu1 %v2749_v43 }
 0x484   :  { %1204 = vmatprep.subr.bf16.mxu0 %v2745_v39  ;;  %1245 = vmatprep.subr.bf16.mxu1 %v2752_v47 }
 0x487   :  { %1205 = vmatpush1.bf16.msra.mxu0 %v2755_v60  ;;  %1246 = vmatpush1.bf16.msra.mxu1 %v2759_v49 }
 0x488   :  { %1305 = vmatprep.subr.bf16.mxu0 %v2667_v52  ;;  %1346 = vmatprep.subr.bf16.mxu1 %v2675_v58 }
 0x53d   :  { %v1109_v38 = vpop.f32.mrb[24].mxu0  ;;  %v1150_v8 = vpop.f32.mrb[40].mxu1 }
 0x53e   :  { %v1157_v10 = vadd.f32 %v1109_v38, %v2609_v48  ;;  %v1111_v34 = vpop.f32.mrb[25].mxu0  ;;  %v1152_v62 = vpop.f32.mrb[41].mxu1  ;;  %v1159_v57 = vadd.f32 %v1150_v8, %v2641_v22 }
 0x53f   :  { %v1158_v2 = vadd.f32 %v1111_v34, %v2611_v51  ;;  %v1113_v30 = vpop.f32.mrb[26].mxu0  ;;  %v1154_v0 = vpop.f32.mrb[42].mxu1  ;;  %v1160_v46 = vadd.f32 %v1152_v62, %v2643_v24 }
 0x540   :  { %v1916_v5 = vmul.f32 -1.442695, %v1157_v10  ;;  %v1114_v59 = vpop.f32.mrb[27].mxu0  ;;  %v1155_v44 = vpop.f32.mrb[43].mxu1 }
 0x541   :  { %v1917_v14 = vmul.f32 -1.442695, %v1158_v2  ;;  %v1918_v16 = vmul.f32 -1.442695, %v1160_v46 }
 0x542   :  { %2094 = vpow2.f32 %v1916_v5 }
 0x543   :  { %2096 = vpow2.f32 %v1917_v14 }
 0x544   :  { %2098 = vpow2.f32 %v1918_v16 }
 0x545   :  { %2100 = vtanh.f32 %v1159_v57 }
 0x54c   :  { %v2095_v32 = vpop.eup %2094 }
 0x54d   :  { %v2097_v36 = vpop.eup %2096  ;;  %v1164_v48 = vadd.f32 1.0, %v2095_v32 }
 0x54e   :  { %v1170_v40 = vadd.f32 1.0, %v2097_v36  ;;  %v2099_v51 = vpop.eup %2098 }
 0x54f   :  { %2102 = vrcp.f32 %v1164_v48  ;;  %v2101_v50 = vpop.eup %2100  ;;  %v1177_v42 = vadd.f32 1.0, %v2099_v51  ;;  %v3149_v48 = vld [vmem:[#allocation16_spill] sm:$0xff] }
 0x550   :  { %2104 = vrcp.f32 %v1170_v40 }
 0x551   :  { %2106 = vrcp.f32 %v1177_v42 }
 0x559   :  { %v2103_v18 = vpop.eup %2102 }
 0x55a   :  { %v2105_v26 = vpop.eup %2104  ;;  %v1181_v41 = vmul.f32 %v2103_v18, %v2101_v50 }
 0x55b   :  { %v1180_v38 = vmul.f32 %v2105_v26, %v2847_v20  ;;  %v2107_v22 = vpop.eup %2106 }
 0x55d   :  { %v2889_v24 = vadd.f32 %v1181_v41, %v1180_v38 }
 0x55f   :  { %2108 = vtanh.f32 %v2889_v24 }
 0x569   :  { %v2109_v8 = vpop.eup %2108 }
 0x56a   :  { %v1184_v10 = vmul.f32 %v2109_v8, %v2107_v22 }
 0x56c   :  { %v1189_v34 = vpack.c.bf16 %v1184_v10, %v1184_v10 }
 0x56e   :  { %1223 = vmatmul.mubr.bf16.vlgmr.msra.gmra.mrb[28].mxu0 %v1189_v34  ;;  %1264 = vmatmul.mubr.bf16.vlgmr.msra.gmra.mrb[44].mxu1 %v1189_v34 }
 0x56f   :  { %1306 = vmatpush1.bf16.msra.mxu0 %v2669_v54  ;;  %1347 = vmatpush1.bf16.msra.mxu1 %v2681_v63 }
 0x570   :  { %1307 = vmatprep.subr.bf16.mxu0 %v2671_v56  ;;  %1348 = vmatprep.subr.bf16.mxu1 %v2683_v1 }
 0x571   :  { %1337 = vmatprep.mubr.bf16.mxu0 %v3148_v45  ;;  %1378 = vmatprep.mubr.bf16.mxu1 %v3148_v45 }
 0x573   :  { %1308 = vmatpush1.bf16.msra.mxu0 %v2678_v61  ;;  %1349 = vmatpush1.bf16.msra.mxu1 %v2689_v4 }
 0x574   :  { %1309 = vmatprep.subr.bf16.mxu0 %v2685_v3  ;;  %1350 = vmatprep.subr.bf16.mxu1 %v2692_v6 }
 0x577   :  { %1310 = vmatpush1.bf16.msra.mxu0 %v2695_v7  ;;  %1351 = vmatpush1.bf16.msra.mxu1 %v2701_v11 }
 0x578   :  { %1311 = vmatprep.subr.bf16.mxu0 %v2697_v9  ;;  %1352 = vmatprep.subr.bf16.mxu1 %v2704_v12 }
 0x57b   :  { %1312 = vmatpush1.bf16.msra.mxu0 %v2707_v13  ;;  %1353 = vmatpush1.bf16.msra.mxu1 %v2713_v17 }
 0x57c   :  { %1313 = vmatprep.subr.bf16.mxu0 %v2709_v15  ;;  %1354 = vmatprep.subr.bf16.mxu1 %v2716_v19 }
 0x57f   :  { %1314 = vmatpush1.bf16.msra.mxu0 %v2719_v21  ;;  %1355 = vmatpush1.bf16.msra.mxu1 %v2725_v25 }
 0x580   :  { %1315 = vmatprep.subr.bf16.mxu0 %v2721_v23  ;;  %1356 = vmatprep.subr.bf16.mxu1 %v2728_v27 }
 0x583   :  { %1316 = vmatpush1.bf16.msra.mxu0 %v2731_v29  ;;  %1357 = vmatpush1.bf16.msra.mxu1 %v2737_v33 }
 0x584   :  { %1317 = vmatprep.subr.bf16.mxu0 %v2733_v31  ;;  %1358 = vmatprep.subr.bf16.mxu1 %v2740_v35 }
 0x587   :  { %1318 = vmatpush1.bf16.msra.mxu0 %v2743_v37  ;;  %1359 = vmatpush1.bf16.msra.mxu1 %v2749_v43 }
 0x588   :  { %1319 = vmatprep.subr.bf16.mxu0 %v2745_v39  ;;  %1360 = vmatprep.subr.bf16.mxu1 %v2752_v47 }
 0x58b   :  { %1320 = vmatpush1.bf16.msra.mxu0 %v2755_v60  ;;  %1361 = vmatpush1.bf16.msra.mxu1 %v2759_v49 }
 0x58c   :  { %1420 = vmatprep.subr.bf16.mxu0 %v2667_v52  ;;  %1461 = vmatprep.subr.bf16.mxu1 %v2675_v58 }
 0x641   :  { %v1224_v20 = vpop.f32.mrb[28].mxu0  ;;  %v1265_v62 = vpop.f32.mrb[44].mxu1 }
 0x642   :  { %v1272_v2 = vadd.f32 %v1224_v20, %v2613_v53  ;;  %v1226_v30 = vpop.f32.mrb[29].mxu0  ;;  %v1267_v0 = vpop.f32.mrb[45].mxu1  ;;  %v1274_v40 = vadd.f32 %v1265_v62, %v3149_v48 }
 0x643   :  { %v1273_v5 = vadd.f32 %v1226_v30, %v2615_v55  ;;  %v1228_v59 = vpop.f32.mrb[30].mxu0  ;;  %v1269_v44 = vpop.f32.mrb[46].mxu1  ;;  %v1275_v32 = vadd.f32 %v1267_v0, %v2647_v28  ;;  %v3150_v30 = vld [vmem:[#allocation8_spill] sm:$0xff] }
 0x644   :  { %v1919_v14 = vmul.f32 -1.442695, %v1272_v2  ;;  %v1229_v46 = vpop.f32.mrb[31].mxu0  ;;  %v1270_v16 = vpop.f32.mrb[47].mxu1  ;;  %v3151_v44 = vld [vmem:[#allocation9_spill] sm:$0xff] }
 0x645   :  { %v1920_v57 = vmul.f32 -1.442695, %v1273_v5  ;;  %v1921_v36 = vmul.f32 -1.442695, %v1275_v32 }
 0x646   :  { %2110 = vpow2.f32 %v1919_v14 }
 0x647   :  { %2112 = vpow2.f32 %v1920_v57 }
 0x648   :  { %2114 = vpow2.f32 %v1921_v36 }
 0x649   :  { %2116 = vtanh.f32 %v1274_v40  ;;  %v3152_v40 = vld [vmem:[#allocation18_spill] sm:$0xff] }
 0x650   :  { %v2111_v51 = vpop.eup %2110 }
 0x651   :  { %v2113_v50 = vpop.eup %2112  ;;  %v1279_v53 = vadd.f32 1.0, %v2111_v51 }
 0x652   :  { %v1285_v18 = vadd.f32 1.0, %v2113_v50  ;;  %v2115_v55 = vpop.eup %2114 }
 0x653   :  { %2118 = vrcp.f32 %v1279_v53  ;;  %v2117_v26 = vpop.eup %2116  ;;  %v1292_v22 = vadd.f32 1.0, %v2115_v55  ;;  %v3153_v53 = vld [vmem:[#allocation17_spill] sm:$0xff] }
 0x654   :  { %2120 = vrcp.f32 %v1285_v18 }
 0x655   :  { %2122 = vrcp.f32 %v1292_v22 }
 0x65d   :  { %v2119_v41 = vpop.eup %2118 }
 0x65e   :  { %v2121_v42 = vpop.eup %2120  ;;  %v1296_v38 = vmul.f32 %v2119_v41, %v2117_v26 }
 0x65f   :  { %v1295_v8 = vmul.f32 %v2121_v42, %v2889_v24  ;;  %v2123_v10 = vpop.eup %2122 }
 0x661   :  { %v2931_v28 = vadd.f32 %v1296_v38, %v1295_v8 }
 0x663   :  { %2124 = vtanh.f32 %v2931_v28 }
 0x66d   :  { %v2125_v34 = vpop.eup %2124 }
 0x66e   :  { %v1299_v20 = vmul.f32 %v2125_v34, %v2123_v10 }
 0x670   :  { %v1304_v62 = vpack.c.bf16 %v1299_v20, %v1299_v20 }
 0x672   :  { %1338 = vmatmul.mubr.bf16.vlgmr.msra.gmra.mrb[32].mxu0 %v1304_v62  ;;  %1379 = vmatmul.mubr.bf16.vlgmr.msra.gmra.mrb[48].mxu1 %v1304_v62 }
 0x673   :  { %1421 = vmatpush1.bf16.msra.mxu0 %v2669_v54  ;;  %1462 = vmatpush1.bf16.msra.mxu1 %v2681_v63 }
 0x674   :  { %1422 = vmatprep.subr.bf16.mxu0 %v2671_v56  ;;  %1463 = vmatprep.subr.bf16.mxu1 %v2683_v1 }
 0x675   :  { %1452 = vmatprep.mubr.bf16.mxu0 %v3148_v45  ;;  %1493 = vmatprep.mubr.bf16.mxu1 %v3148_v45 }
 0x677   :  { %1423 = vmatpush1.bf16.msra.mxu0 %v2678_v61  ;;  %1464 = vmatpush1.bf16.msra.mxu1 %v2689_v4 }
 0x678   :  { %1424 = vmatprep.subr.bf16.mxu0 %v2685_v3  ;;  %1465 = vmatprep.subr.bf16.mxu1 %v2692_v6 }
 0x67b   :  { %1425 = vmatpush1.bf16.msra.mxu0 %v2695_v7  ;;  %1466 = vmatpush1.bf16.msra.mxu1 %v2701_v11 }
 0x67c   :  { %1426 = vmatprep.subr.bf16.mxu0 %v2697_v9  ;;  %1467 = vmatprep.subr.bf16.mxu1 %v2704_v12 }
 0x67f   :  { %1427 = vmatpush1.bf16.msra.mxu0 %v2707_v13  ;;  %1468 = vmatpush1.bf16.msra.mxu1 %v2713_v17 }
 0x680   :  { %1428 = vmatprep.subr.bf16.mxu0 %v2709_v15  ;;  %1469 = vmatprep.subr.bf16.mxu1 %v2716_v19 }
 0x683   :  { %1429 = vmatpush1.bf16.msra.mxu0 %v2719_v21  ;;  %1470 = vmatpush1.bf16.msra.mxu1 %v2725_v25 }
 0x684   :  { %1430 = vmatprep.subr.bf16.mxu0 %v2721_v23  ;;  %1471 = vmatprep.subr.bf16.mxu1 %v2728_v27 }
 0x687   :  { %1431 = vmatpush1.bf16.msra.mxu0 %v2731_v29  ;;  %1472 = vmatpush1.bf16.msra.mxu1 %v2737_v33 }
 0x688   :  { %1432 = vmatprep.subr.bf16.mxu0 %v2733_v31  ;;  %1473 = vmatprep.subr.bf16.mxu1 %v2740_v35 }
 0x68b   :  { %1433 = vmatpush1.bf16.msra.mxu0 %v2743_v37  ;;  %1474 = vmatpush1.bf16.msra.mxu1 %v2749_v43 }
 0x68c   :  { %1434 = vmatprep.subr.bf16.mxu0 %v2745_v39  ;;  %1475 = vmatprep.subr.bf16.mxu1 %v2752_v47 }
 0x68f   :  { %1435 = vmatpush1.bf16.msra.mxu0 %v2755_v60  ;;  %1476 = vmatpush1.bf16.msra.mxu1 %v2759_v49 }
 0x690   :  { %1535 = vmatprep.subr.bf16.mxu0 %v2667_v52  ;;  %1576 = vmatprep.subr.bf16.mxu1 %v2675_v58 }
 0x745   :  { %v1339_v24 = vpop.f32.mrb[32].mxu0  ;;  %v1380_v2 = vpop.f32.mrb[48].mxu1 }
 0x746   :  { %v1387_v0 = vadd.f32 %v1339_v24, %v3150_v30  ;;  %v1341_v5 = vpop.f32.mrb[33].mxu0  ;;  %v1382_v59 = vpop.f32.mrb[49].mxu1  ;;  %v1389_v18 = vadd.f32 %v1380_v2, %v3153_v53 }
 0x747   :  { %v1388_v14 = vadd.f32 %v1341_v5, %v3151_v44  ;;  %v1343_v46 = vpop.f32.mrb[34].mxu0  ;;  %v1384_v16 = vpop.f32.mrb[50].mxu1  ;;  %v1390_v51 = vadd.f32 %v1382_v59, %v3152_v40  ;;  %v3155_v44 = vld [vmem:[#allocation11_spill] sm:$0xff]  ;;  %v3156_v40 = vld [vmem:[#allocation20_spill] sm:$0xff] }
 0x748   :  { %v1922_v57 = vmul.f32 -1.442695, %v1387_v0  ;;  %v1344_v32 = vpop.f32.mrb[35].mxu0  ;;  %v1385_v36 = vpop.f32.mrb[51].mxu1 }
 0x749   :  { %v1923_v48 = vmul.f32 -1.442695, %v1388_v14  ;;  %v1924_v50 = vmul.f32 -1.442695, %v1390_v51 }
 0x74a   :  { %2126 = vpow2.f32 %v1922_v57 }
 0x74b   :  { %2128 = vpow2.f32 %v1923_v48 }
 0x74c   :  { %2130 = vpow2.f32 %v1924_v50 }
 0x74d   :  { %2132 = vtanh.f32 %v1389_v18 }
 0x754   :  { %v2127_v55 = vpop.eup %2126 }
 0x755   :  { %v2129_v26 = vpop.eup %2128  ;;  %v1394_v41 = vadd.f32 1.0, %v2127_v55 }
 0x756   :  { %v1400_v42 = vadd.f32 1.0, %v2129_v26  ;;  %v2131_v38 = vpop.eup %2130 }
 0x757   :  { %2134 = vrcp.f32 %v1394_v41  ;;  %v2133_v22 = vpop.eup %2132  ;;  %v1407_v20 = vadd.f32 1.0, %v2131_v38 }
 0x758   :  { %2136 = vrcp.f32 %v1400_v42 }
 0x759   :  { %2138 = vrcp.f32 %v1407_v20 }
 0x761   :  { %v2135_v8 = vpop.eup %2134 }
 0x762   :  { %v2137_v10 = vpop.eup %2136  ;;  %v1411_v34 = vmul.f32 %v2135_v8, %v2133_v22 }
 0x763   :  { %v1410_v62 = vmul.f32 %v2137_v10, %v2931_v28  ;;  %v2139_v2 = vpop.eup %2138 }
 0x765   :  { %v2973_v24 = vadd.f32 %v1411_v34, %v1410_v62 }
 0x767   :  { %2140 = vtanh.f32 %v2973_v24 }
 0x771   :  { %v2141_v30 = vpop.eup %2140 }
 0x772   :  { %v1414_v0 = vmul.f32 %v2141_v30, %v2139_v2 }
 0x774   :  { %v1419_v5 = vpack.c.bf16 %v1414_v0, %v1414_v0 }
 0x776   :  { %1453 = vmatmul.mubr.bf16.vlgmr.msra.gmra.mrb[36].mxu0 %v1419_v5  ;;  %1494 = vmatmul.mubr.bf16.vlgmr.msra.gmra.mrb[52].mxu1 %v1419_v5  ;;  %v2190_v5 = vld [vmem:[#allocation3] sm:$0xff] }
 0x777   :  { %1536 = vmatpush1.bf16.msra.mxu0 %v2669_v54  ;;  %1577 = vmatpush1.bf16.msra.mxu1 %v2681_v63 }
 0x778   :  { %1537 = vmatprep.subr.bf16.mxu0 %v2671_v56  ;;  %1578 = vmatprep.subr.bf16.mxu1 %v2683_v1 }
 0x779   :  { %1567 = vmatprep.mubr.bf16.mxu0 %v3148_v45  ;;  %1608 = vmatprep.mubr.bf16.mxu1 %v3148_v45 }
 0x77b   :  { %1538 = vmatpush1.bf16.msra.mxu0 %v2678_v61  ;;  %1579 = vmatpush1.bf16.msra.mxu1 %v2689_v4  ;;  %v3154_v61 = vld [vmem:[#allocation10_spill] sm:$0xff] }
 0x77c   :  { %1539 = vmatprep.subr.bf16.mxu0 %v2685_v3  ;;  %1580 = vmatprep.subr.bf16.mxu1 %v2692_v6 }
 0x77f   :  { %1540 = vmatpush1.bf16.msra.mxu0 %v2695_v7  ;;  %1581 = vmatpush1.bf16.msra.mxu1 %v2701_v11 }
 0x780   :  { %1541 = vmatprep.subr.bf16.mxu0 %v2697_v9  ;;  %1582 = vmatprep.subr.bf16.mxu1 %v2704_v12 }
 0x783   :  { %1542 = vmatpush1.bf16.msra.mxu0 %v2707_v13  ;;  %1583 = vmatpush1.bf16.msra.mxu1 %v2713_v17 }
 0x784   :  { %1543 = vmatprep.subr.bf16.mxu0 %v2709_v15  ;;  %1584 = vmatprep.subr.bf16.mxu1 %v2716_v19 }
 0x787   :  { %1544 = vmatpush1.bf16.msra.mxu0 %v2719_v21  ;;  %1585 = vmatpush1.bf16.msra.mxu1 %v2725_v25 }
 0x788   :  { %1545 = vmatprep.subr.bf16.mxu0 %v2721_v23  ;;  %1586 = vmatprep.subr.bf16.mxu1 %v2728_v27 }
 0x78b   :  { %1546 = vmatpush1.bf16.msra.mxu0 %v2731_v29  ;;  %1587 = vmatpush1.bf16.msra.mxu1 %v2737_v33 }
 0x78c   :  { %1547 = vmatprep.subr.bf16.mxu0 %v2733_v31  ;;  %1588 = vmatprep.subr.bf16.mxu1 %v2740_v35 }
 0x78f   :  { %1548 = vmatpush1.bf16.msra.mxu0 %v2743_v37  ;;  %1589 = vmatpush1.bf16.msra.mxu1 %v2749_v43 }
 0x790   :  { %1549 = vmatprep.subr.bf16.mxu0 %v2745_v39  ;;  %1590 = vmatprep.subr.bf16.mxu1 %v2752_v47 }
 0x793   :  { %1550 = vmatpush1.bf16.msra.mxu0 %v2755_v60  ;;  %1591 = vmatpush1.bf16.msra.mxu1 %v2759_v49 }
 0x794   :  { %1650 = vmatprep.subr.bf16.mxu0 %v2667_v52  ;;  %1691 = vmatprep.subr.bf16.mxu1 %v2675_v58  ;;  %v3157_v58 = vld [vmem:[#allocation19_spill] sm:$0xff] }
 0x849   :  { %v1454_v54 = vpop.f32.mrb[36].mxu0  ;;  %v1495_v56 = vpop.f32.mrb[52].mxu1 }
 0x84a   :  { %v1502_v3 = vadd.f32 %v1454_v54, %v3154_v61  ;;  %v1456_v28 = vpop.f32.mrb[37].mxu0  ;;  %v1497_v59 = vpop.f32.mrb[53].mxu1  ;;  %v1504_v50 = vadd.f32 %v1495_v56, %v3157_v58  ;;  %v2191_v54 = vld [vmem:[#allocation3 + $0x28] sm:$0xff]  ;;  %v1764_v58 = vld [vmem:[%s3123_s6 + $0x20] sm:$0xff] }
 0x84b   :  { %v1503_v14 = vadd.f32 %v1456_v28, %v3155_v44  ;;  %v1458_v46 = vpop.f32.mrb[38].mxu0  ;;  %v1499_v16 = vpop.f32.mrb[54].mxu1  ;;  %v1505_v52 = vadd.f32 %v1497_v59, %v3156_v40  ;;  %v2193_v56 = vld [vmem:[#allocation3 + $0x48] sm:$0xff]  ;;  %v1762_v40 = vld [vmem:[%s3123_s6 + $0x10] sm:$0xff] }
 0x84c   :  { %v1925_v57 = vmul.f32 -1.442695, %v1502_v3  ;;  %v1459_v32 = vpop.f32.mrb[39].mxu0  ;;  %v1500_v36 = vpop.f32.mrb[55].mxu1 }
 0x84d   :  { %v1926_v48 = vmul.f32 -1.442695, %v1503_v14  ;;  %v1927_v51 = vmul.f32 -1.442695, %v1505_v52  ;;  %v1760_v32 = vld [vmem:[%s3123_s6] sm:$0xff]  ;;  %v1761_v36 = vld [vmem:[%s3123_s6 + $0x8] sm:$0xff] }
 0x84e   :  { %2142 = vpow2.f32 %v1925_v57  ;;  %v1763_v52 = vld [vmem:[%s3123_s6 + $0x18] sm:$0xff] }
 0x84f   :  { %2144 = vpow2.f32 %v1926_v48  ;;  %v2019_v48 = vpack.c.bf16 %v1761_v36, %v1760_v32 }
 0x850   :  { %2146 = vpow2.f32 %v1927_v51  ;;  %v2022_v51 = vpack.c.bf16 %v1763_v52, %v1762_v40 }
 0x851   :  { %2148 = vtanh.f32 %v1504_v50  ;;  %v1765_v50 = vld [vmem:[%s3123_s6 + $0x28] sm:$0xff] }
 0x858   :  { %v2143_v53 = vpop.eup %2142 }
 0x859   :  { %v2145_v18 = vpop.eup %2144  ;;  %v1509_v55 = vadd.f32 1.0, %v2143_v53  ;;  %v2025_v53 = vpack.c.bf16 %v1765_v50, %v1764_v58 }
 0x85a   :  { %v1515_v26 = vadd.f32 1.0, %v2145_v18  ;;  %v2147_v41 = vpop.eup %2146  ;;  %v1766_v18 = vld [vmem:[%s3123_s6 + $0x30] sm:$0xff] }
 0x85b   :  { %2150 = vrcp.f32 %v1509_v55  ;;  %v2149_v42 = vpop.eup %2148  ;;  %v1522_v10 = vadd.f32 1.0, %v2147_v41  ;;  %v1767_v55 = vld [vmem:[%s3123_s6 + $0x38] sm:$0xff]  ;;  %v1768_v41 = vld [vmem:[%s3123_s6 + $0x40] sm:$0xff] }
 0x85c   :  { %2152 = vrcp.f32 %v1515_v26  ;;  %v2028_v26 = vpack.c.bf16 %v1767_v55, %v1766_v18 }
 0x85d   :  { %2154 = vrcp.f32 %v1522_v10  ;;  %v1772_v10 = vld [vmem:[%s3123_s6 + $0x60] sm:$0xff] }
 0x865   :  { %v2151_v38 = vpop.eup %2150 }
 0x866   :  { %v2153_v22 = vpop.eup %2152  ;;  %v1526_v8 = vmul.f32 %v2151_v38, %v2149_v42  ;;  %v1769_v42 = vld [vmem:[%s3123_s6 + $0x48] sm:$0xff] }
 0x867   :  { %v1525_v34 = vmul.f32 %v2153_v22, %v2973_v24  ;;  %v2155_v62 = vpop.eup %2154  ;;  %v2192_v24 = vld [vmem:[#allocation3 + $0x20] sm:$0xff]  ;;  %v2031_v38 = vpack.c.bf16 %v1769_v42, %v1768_v41  ;;  %v1770_v22 = vld [vmem:[%s3123_s6 + $0x50] sm:$0xff] }
 0x869   :  { %v3015_v20 = vadd.f32 %v1526_v8, %v1525_v34  ;;  %v1771_v8 = vld [vmem:[%s3123_s6 + $0x58] sm:$0xff] }
 0x86a   :  { %v2034_v34 = vpack.c.bf16 %v1771_v8, %v1770_v22 }
 0x86b   :  { %2156 = vtanh.f32 %v3015_v20 }
 0x875   :  { %v2157_v2 = vpop.eup %2156 }
 0x876   :  { %v1529_v30 = vmul.f32 %v2157_v2, %v2155_v62  ;;  %v2199_v62 = vmov 0.0  }
 0x878   :  { %v1534_v0 = vpack.c.bf16 %v1529_v30, %v1529_v30  ;;  %v1774_v30 = vld [vmem:[%s3123_s6 + $0x70] sm:$0xff] }
 0x87a   :  { %1568 = vmatmul.mubr.bf16.vlgmr.msra.gmra.mrb[40].mxu0 %v1534_v0  ;;  %1609 = vmatmul.mubr.bf16.vlgmr.msra.gmra.mrb[56].mxu1 %v1534_v0  ;;  %v1775_v0 = vld [vmem:[%s3123_s6 + $0x78] sm:$0xff] }
 0x87b   :  { %1651 = vmatpush1.bf16.msra.mxu0 %v2190_v5  ;;  %1692 = vmatpush1.bf16.msra.mxu1 %v2681_v63  ;;  %v2040_v5 = vpack.c.bf16 %v1775_v0, %v1774_v30 }
 0x87c   :  { %1652 = vmatprep.subr.bf16.mxu0 %v2191_v54  ;;  %1693 = vmatprep.subr.bf16.mxu1 %v2683_v1 }
 0x87d   :  { %1682 = vmatprep.mubr.bf16.mxu0 %v3148_v45  ;;  %1723 = vmatprep.mubr.bf16.mxu1 %v3148_v45  ;;  %v3158_v45 = vmov 0.0|0.0  }
 0x87f   :  { %1653 = vmatpush1.bf16.msra.mxu0 %v2192_v24  ;;  %1694 = vmatpush1.bf16.msra.mxu1 %v2689_v4  ;;  %v3159_v4 = vld [vmem:[#allocation12_spill] sm:$0xff] }
 0x880   :  { %1654 = vmatprep.subr.bf16.mxu0 %v2193_v56  ;;  %1695 = vmatprep.subr.bf16.mxu1 %v2692_v6  ;;  %v3163_v56 = vld [vmem:[#allocation14_spill] sm:$0xff] }
 0x883   :  { %1655 = vmatpush1.bf16.msra.mxu0 %v2695_v7  ;;  %1696 = vmatpush1.bf16.msra.mxu1 %v2701_v11  ;;  %v3160_v11 = vld [vmem:[#allocation13_spill] sm:$0xff] }
 0x884   :  { %1656 = vmatprep.subr.bf16.mxu0 %v2697_v9  ;;  %1697 = vmatprep.subr.bf16.mxu1 %v2704_v12 }
 0x887   :  { %1657 = vmatpush1.bf16.msra.mxu0 %v2707_v13  ;;  %1698 = vmatpush1.bf16.msra.mxu1 %v2713_v17 }
 0x888   :  { %1658 = vmatprep.subr.bf16.mxu0 %v2709_v15  ;;  %1699 = vmatprep.subr.bf16.mxu1 %v2716_v19 }
 0x88b   :  { %1659 = vmatpush1.bf16.msra.mxu0 %v2719_v21  ;;  %1700 = vmatpush1.bf16.msra.mxu1 %v2725_v25 }
 0x88c   :  { %1660 = vmatprep.subr.bf16.mxu0 %v2721_v23  ;;  %1701 = vmatprep.subr.bf16.mxu1 %v2728_v27  ;;  %v3162_v27 = vld [vmem:[#allocation21_spill] sm:$0xff] }
 0x88f   :  { %1661 = vmatpush1.bf16.msra.mxu0 %v2731_v29  ;;  %1702 = vmatpush1.bf16.msra.mxu1 %v2737_v33 }
 0x890   :  { %1662 = vmatprep.subr.bf16.mxu0 %v2733_v31  ;;  %1703 = vmatprep.subr.bf16.mxu1 %v2740_v35 }
 0x893   :  { %1663 = vmatpush1.bf16.msra.mxu0 %v2743_v37  ;;  %1704 = vmatpush1.bf16.msra.mxu1 %v2749_v43 }
 0x894   :  { %1664 = vmatprep.subr.bf16.mxu0 %v2745_v39  ;;  %1705 = vmatprep.subr.bf16.mxu1 %v2752_v47 }
 0x897   :  { %1665 = vmatpush1.bf16.msra.mxu0 %v2755_v60  ;;  %1706 = vmatpush1.bf16.msra.mxu1 %v2759_v49  ;;  %v3161_v60 = vld [vmem:[#allocation22_spill] sm:$0xff] }
 0x898   :  { %2018 = vmatprep.subr.bf16.mxu0 %v3158_v45 }
 0x94d   :  { %v1569_v63 = vpop.f32.mrb[40].mxu0  ;;  %v1610_v1 = vpop.f32.mrb[56].mxu1 }
 0x94e   :  { %v1617_v6 = vadd.f32 %v1569_v63, %v3159_v4  ;;  %v1571_v7 = vpop.f32.mrb[41].mxu0  ;;  %v1612_v9 = vpop.f32.mrb[57].mxu1  ;;  %v1619_v29 = vadd.f32 %v1610_v1, %v3162_v27 }
 0x94f   :  { %v1618_v12 = vadd.f32 %v1571_v7, %v3160_v11  ;;  %v1573_v13 = vpop.f32.mrb[42].mxu0  ;;  %v1614_v15 = vpop.f32.mrb[58].mxu1  ;;  %v1620_v49 = vadd.f32 %v1612_v9, %v3161_v60 }
 0x950   :  { %v1928_v17 = vmul.f32 -1.442695, %v1617_v6  ;;  %v1574_v19 = vpop.f32.mrb[43].mxu0  ;;  %v1615_v21 = vpop.f32.mrb[59].mxu1  ;;  %v3164_v6 = vld [vmem:[#allocation15_spill] sm:$0xff] }
 0x951   :  { %v1929_v23 = vmul.f32 -1.442695, %v1618_v12  ;;  %v1930_v25 = vmul.f32 -1.442695, %v1620_v49  ;;  %v3165_v19 = vld [vmem:[#allocation24_spill] sm:$0xff] }
 0x952   :  { %2158 = vpow2.f32 %v1928_v17 }
 0x953   :  { %2160 = vpow2.f32 %v1929_v23  ;;  %v3166_v23 = vld [vmem:[#allocation23_spill] sm:$0xff] }
 0x954   :  { %2162 = vpow2.f32 %v1930_v25 }
 0x955   :  { %2164 = vtanh.f32 %v1619_v29 }
 0x95c   :  { %v2159_v31 = vpop.eup %2158 }
 0x95d   :  { %v2161_v33 = vpop.eup %2160  ;;  %v1624_v35 = vadd.f32 1.0, %v2159_v31 }
 0x95e   :  { %v1630_v37 = vadd.f32 1.0, %v2161_v33  ;;  %v2163_v39 = vpop.eup %2162 }
 0x95f   :  { %2166 = vrcp.f32 %v1624_v35  ;;  %v2165_v43 = vpop.eup %2164  ;;  %v1637_v28 = vadd.f32 1.0, %v2163_v39 }
 0x960   :  { %2168 = vrcp.f32 %v1630_v37 }
 0x961   :  { %2170 = vrcp.f32 %v1637_v28 }
 0x969   :  { %v2167_v47 = vpop.eup %2166 }
 0x96a   :  { %v2169_v61 = vpop.eup %2168  ;;  %v1641_v3 = vmul.f32 %v2167_v47, %v2165_v43 }
 0x96b   :  { %v1640_v59 = vmul.f32 %v2169_v61, %v3015_v20  ;;  %v2171_v14 = vpop.eup %2170  ;;  %v1773_v20 = vld [vmem:[%s3123_s6 + $0x68] sm:$0xff] }
 0x96c   :  { %v2037_v2 = vpack.c.bf16 %v1773_v20, %v1772_v10 }
 0x96d   :  { %v3052_v44 = vadd.f32 %v1641_v3, %v1640_v59 }
 0x96f   :  { %2172 = vtanh.f32 %v3052_v44 }
 0x979   :  { %v2173_v46 = vpop.eup %2172 }
 0x97a   :  { %v1644_v16 = vmul.f32 %v2173_v46, %v2171_v14  ;;  %v1934_v14 = vld [vmem:[#allocation5] ss:$0 sm:$0xff] }
 0x97c   :  { %v1649_v57 = vpack.c.bf16 %v1644_v16, %v1644_v16 }
 0x97e   :  { %1683 = vmatmul.mubr.bf16.vlgmr.msra.gmra.mrb[44].mxu0 %v1649_v57  ;;  %1724 = vmatmul.mubr.bf16.vlgmr.msra.gmra.mrb[60].mxu1 %v1649_v57 }
 0x97f   :  { %2020 = vmatpush3.bf16.msra.mxu0 %v2019_v48  ;;  %1985 = vmatprep.mubr.msk.f32.mxu0 %vm2198_vm3, %v2199_v62 }
 0x980   :  { %2021 = vmatprep.subr.bf16.mxu0 %v3158_v45 }
 0x983   :  { %2023 = vmatpush3.bf16.msra.mxu0 %v2022_v51 }
 0x984   :  { %2024 = vmatprep.subr.bf16.mxu0 %v3158_v45 }
 0x987   :  { %2026 = vmatpush3.bf16.msra.mxu0 %v2025_v53 }
 0x988   :  { %2027 = vmatprep.subr.bf16.mxu0 %v3158_v45 }
 0x98b   :  { %2029 = vmatpush3.bf16.msra.mxu0 %v2028_v26 }
 0x98c   :  { %2030 = vmatprep.subr.bf16.mxu0 %v3158_v45 }
 0x98f   :  { %2032 = vmatpush3.bf16.msra.mxu0 %v2031_v38 }
 0x990   :  { %2033 = vmatprep.subr.bf16.mxu0 %v3158_v45 }
 0x993   :  { %2035 = vmatpush3.bf16.msra.mxu0 %v2034_v34 }
 0x994   :  { %2036 = vmatprep.subr.bf16.mxu0 %v3158_v45 }
 0x997   :  { %2038 = vmatpush3.bf16.msra.mxu0 %v2037_v2 }
 0x998   :  { %2039 = vmatprep.subr.bf16.mxu0 %v3158_v45 }
 0x99b   :  { %2041 = vmatpush3.bf16.msra.mxu0 %v2040_v5 }
 0xa51   :  { %v1684_v54 = vpop.f32.mrb[44].mxu0  ;;  %v1725_v24 = vpop.f32.mrb[60].mxu1 }
 0xa52   :  { %v1732_v63 = vadd.f32 %v1684_v54, %v3163_v56  ;;  %v1686_v1 = vpop.f32.mrb[45].mxu0  ;;  %v1727_v4 = vpop.f32.mrb[61].mxu1  ;;  %v1734_v60 = vadd.f32 %v1725_v24, %v3166_v23 }
 0xa53   :  { %v1733_v7 = vadd.f32 %v1686_v1, %v3164_v6  ;;  %v1688_v9 = vpop.f32.mrb[46].mxu0  ;;  %v1729_v11 = vpop.f32.mrb[62].mxu1  ;;  %v1735_v21 = vadd.f32 %v1727_v4, %v3165_v19 }
 0xa54   :  { %v1931_v12 = vmul.f32 -1.442695, %v1732_v63  ;;  %v1689_v13 = vpop.f32.mrb[47].mxu0  ;;  %v1730_v15 = vpop.f32.mrb[63].mxu1 }
 0xa55   :  { %v1932_v17 = vmul.f32 -1.442695, %v1733_v7  ;;  %v1933_v45 = vmul.f32 -1.442695, %v1735_v21 }
 0xa56   :  { %2174 = vpow2.f32 %v1931_v12 }
 0xa57   :  { %2176 = vpow2.f32 %v1932_v17 }
 0xa58   :  { %2178 = vpow2.f32 %v1933_v45 }
 0xa59   :  { %2180 = vtanh.f32 %v1734_v60 }
 0xa60   :  { %v2175_v49 = vpop.eup %2174 }
 0xa61   :  { %v2177_v25 = vpop.eup %2176  ;;  %v1739_v27 = vadd.f32 1.0, %v2175_v49 }
 0xa62   :  { %v1745_v29 = vadd.f32 1.0, %v2177_v25  ;;  %v2179_v31 = vpop.eup %2178 }
 0xa63   :  { %2182 = vrcp.f32 %v1739_v27  ;;  %v2181_v33 = vpop.eup %2180  ;;  %v1752_v43 = vadd.f32 1.0, %v2179_v31 }
 0xa64   :  { %2184 = vrcp.f32 %v1745_v29 }
 0xa65   :  { %2186 = vrcp.f32 %v1752_v43 }
 0xa6d   :  { %v2183_v35 = vpop.eup %2182 }
 0xa6e   :  { %v2185_v37 = vpop.eup %2184  ;;  %v1756_v39 = vmul.f32 %v2183_v35, %v2181_v33 }
 0xa6f   :  { %v1755_v47 = vmul.f32 %v2185_v37, %v3052_v44  ;;  %v2187_v3 = vpop.eup %2186 }
 0xa71   :  { %v1757_v61 = vadd.f32 %v1756_v39, %v1755_v47 }
 0xa73   :  { %2188 = vtanh.f32 %v1757_v61 }
 0xa7d   :  { %v2189_v28 = vpop.eup %2188 }
 0xa7e   :  { %v1759_v59 = vmul.f32 %v2189_v28, %v2187_v3 }
 0xa80   :  { %1986 = vmatmul.mubr.f32.vlgmr.msra.gmra.mrb[48].mxu0 %v1759_v59 }
 0xb53   :  { %v1849_v46 = vpop.f32.mrb[48].mxu0 }
 0xb54   :  { %v1850_v16 = vadd.f32 %v1934_v14, %v1849_v46  ;;  %v1987_v57 = vpop.f32.mrb[49].mxu0 }
 0xb56   :  { %1854 = vst.msk [vmem:[%s3125_s8] sm:$0xff] %vm1853_vm4, %v1850_v16 }
 0xb57   :  { %1859 = vsyncmov [#allocation4] }
 0xb5a   :  { %s1860_s26 = vpop.sfrf %1859 }
 0xb5b   :  { %p1935_p0 = scmp.ne.s32.totalorder %s1860_s26, 0 }
 0xb5d   :  { %1864 = shalt.err (%p1935_p0)  }

</bundles_post_ra>
